<compile_context>
chip_gen: v7x
topology: tpu7x:2x2x1
jax: 0.10.0
libtpu: 0.0.40
codegen_flags: <defaults>
</compile_context>

<pallas_src>
import functools

import jax
import jax.numpy as jnp
from jax import lax
from jax.experimental import pallas as pl
from jax.experimental.pallas import tpu as pltpu

LEAK = 0.2       # LeakyReLU negative slope
BN_EPS = 1e-5    # BatchNorm eps


def _double_conv_kernel(x_ref, w1_ref, w2_ref, s1_ref, t1_ref, s2_ref, t2_ref,
                        o_ref, *, nblk, H, W):
    """Process `nblk` samples.

    x_ref : (nblk, cin, L)   VMEM, L = (H+2)*(W+2)+2, flattened zero-padded image
                              with a 1-element margin on each end.
    w1_ref: (9, cin, cin)    VMEM, tap-major 3x3 weights [ky*3+kx][co][ci]
    w2_ref: (cout, cin)      VMEM, 1x1 weights
    s*/t* : (c, 1)           VMEM, per-channel scale/shift (conv bias + BN folded)
    o_ref : (nblk, cout, H*(W+2)) VMEM, padded-width output (2 junk cols per row,
                              dropped by the wrapper).
    """
    P = W + 2
    HP = H * P
    cin = x_ref.shape[1]

    s1 = s1_ref[...]
    t1 = t1_ref[...]
    s2 = s2_ref[...]
    t2 = t2_ref[...]
    w2 = w2_ref[...]

    for nb in range(nblk):
        x = x_ref[nb]                                     # (cin, L) f32

        # --- Conv2d(in_ch, in_ch, 3, padding=1): 9 shifted MXU matmuls ---
        acc = jnp.zeros((cin, HP), jnp.float32)
        for k in range(9):
            ky, kx = k // 3, k % 3
            start = ky * P + kx                           # static slice offset
            xs = x[:, start:start + HP]                   # (cin, HP)
            acc = acc + jnp.dot(w1_ref[k], xs,
                                preferred_element_type=jnp.float32,
                                precision=jax.lax.Precision.HIGHEST)

        # BN1 (folded) + LeakyReLU(0.2).  Dropout2d is eval-mode identity.
        # TODO(synk): training-mode Dropout2d (per-channel Bernoulli mask via
        #             pltpu.prng_*) and training-mode BatchNorm batch statistics
        #             are not implemented (eval-mode forward only).
        h = acc * s1 + t1
        h = jnp.where(h > 0, h, LEAK * h)

        # --- Conv2d(in_ch, out_ch, 1): single MXU matmul + BN2 + LeakyReLU ---
        o = jnp.dot(w2, h, preferred_element_type=jnp.float32,
                    precision=jax.lax.Precision.HIGHEST)
        o = o * s2 + t2
        o_ref[nb] = jnp.where(o > 0, o, LEAK * o)


def _pick_nblk(N):
    """Samples per grid step: amortize per-step overhead, but keep >=2 grid
    steps when N >= 2 so both v7x TensorCores get work."""
    for cand in (4, 2):
        if N % cand == 0 and N // cand >= 2:
            return cand
    return 1


def double_conv(x_nchw, params):
    """params = (w1, b1, g1, be1, m1, v1, w2, b2, g2, be2, m2, v2), PyTorch shapes."""
    (w1, b1, g1, be1, m1, v1, w2, b2, g2, be2, m2, v2) = params
    N, cin, H, W = x_nchw.shape
    cout = w2.shape[0]
    P = W + 2
    HP = H * P
    L = (H + 2) * P + 2

    # Fold conv bias + eval-mode BatchNorm into per-channel scale/shift:
    #   BN(conv + b) = conv * s + ((b - mean) * s + beta),  s = gamma / sqrt(var + eps)
    s1 = (g1 / jnp.sqrt(v1 + BN_EPS)).astype(jnp.float32)
    t1 = ((b1 - m1) * s1 + be1).astype(jnp.float32)
    s2 = (g2 / jnp.sqrt(v2 + BN_EPS)).astype(jnp.float32)
    t2 = ((b2 - m2) * s2 + be2).astype(jnp.float32)

    # Weight layouts for the MXU:
    w1_taps = jnp.transpose(w1, (2, 3, 0, 1)).reshape(9, cin, cin).astype(jnp.float32)
    w2_mat = w2[:, :, 0, 0].astype(jnp.float32)           # (cout, cin)

    # Zero-pad H/W by 1 (3x3 halo), flatten spatial, and add a 1-element margin
    # so every 3x3 tap is a contiguous in-bounds slice of the flat image.
    # (Kept as one small wrapper pad instead of an in-kernel scatter; at very
    #  large cin/H/W one would tile H with a 1-row halo and pad in-kernel.)
    xp = jnp.pad(x_nchw.astype(jnp.float32), ((0, 0), (0, 0), (1, 1), (1, 1)))
    xf = jnp.pad(xp.reshape(N, cin, (H + 2) * P), ((0, 0), (0, 0), (1, 1)))

    nblk = _pick_nblk(N)
    grid = (N // nblk,)

    kernel = functools.partial(_double_conv_kernel, nblk=nblk, H=H, W=W)

    flops = 2 * N * HP * (9 * cin * cin + cout * cin)
    bytes_accessed = 4 * (N * cin * L + 9 * cin * cin + cout * cin
                          + 2 * (cin + cout) + N * cout * HP)

    out_flat = pl.pallas_call(
        kernel,
        out_shape=jax.ShapeDtypeStruct((N, cout, HP), jnp.float32),
        grid=grid,
        in_specs=[
            pl.BlockSpec((nblk, cin, L), lambda n: (n, 0, 0)),
            pl.BlockSpec((9, cin, cin), lambda n: (0, 0, 0)),
            pl.BlockSpec((cout, cin), lambda n: (0, 0)),
            pl.BlockSpec((cin, 1), lambda n: (0, 0)),
            pl.BlockSpec((cin, 1), lambda n: (0, 0)),
            pl.BlockSpec((cout, 1), lambda n: (0, 0)),
            pl.BlockSpec((cout, 1), lambda n: (0, 0)),
        ],
        out_specs=pl.BlockSpec((nblk, cout, HP), lambda n: (n, 0, 0)),
        compiler_params=pltpu.CompilerParams(dimension_semantics=("parallel",)),
        cost_estimate=pl.CostEstimate(flops=flops, transcendentals=0,
                                      bytes_accessed=bytes_accessed),
    )(xf, w1_taps, w2_mat,
      s1.reshape(cin, 1), t1.reshape(cin, 1),
      s2.reshape(cout, 1), t2.reshape(cout, 1))

    # Drop the two padded-width columns per row and restore NCHW.
    return out_flat.reshape(N, cout, H, P)[:, :, :, 1:W + 1]


def reference(x, params):
    """Pure-JAX reference matching PyTorch eval-mode forward."""
    (w1, b1, g1, be1, m1, v1, w2, b2, g2, be2, m2, v2) = params
    dn = ("NCHW", "OIHW", "NCHW")
    hi = jax.lax.Precision.HIGHEST

    def bn(y, g, be, m, v):
        return (y - m[None, :, None, None]) / jnp.sqrt(v + BN_EPS)[None, :, None, None] \
               * g[None, :, None, None] + be[None, :, None, None]

    y = lax.conv_general_dilated(x, w1, (1, 1), ((1, 1), (1, 1)),
                                 dimension_numbers=dn, precision=hi)
    y = y + b1[None, :, None, None]
    y = bn(y, g1, be1, m1, v1)
    y = jnp.where(y > 0, y, LEAK * y)
    # Dropout2d: identity in eval mode.
    y = lax.conv_general_dilated(y, w2, (1, 1), "VALID",
                                 dimension_numbers=dn, precision=hi)
    y = y + b2[None, :, None, None]
    y = bn(y, g2, be2, m2, v2)
    return jnp.where(y > 0, y, LEAK * y)


if __name__ == "__main__":
    N, in_ch, out_ch, H, W = 2, 4, 8, 16, 16
    key = jax.random.PRNGKey(0)
    k_x, k_w1, k_b1, k_w2, k_b2 = jax.random.split(key, 5)

    x = jax.random.normal(k_x, (N, in_ch, H, W), jnp.float32)

    # Deterministic parameter init (shapes from DoubleConv.__init__):
    w1 = 0.1 * jax.random.normal(k_w1, (in_ch, in_ch, 3, 3), jnp.float32)
    b1 = 0.05 * jax.random.normal(k_b1, (in_ch,), jnp.float32)
    w2 = 0.1 * jax.random.normal(k_w2, (out_ch, in_ch, 1, 1), jnp.float32)
    b2 = 0.05 * jax.random.normal(k_b2, (out_ch,), jnp.float32)
    # nn.BatchNorm2d init: gamma=1, beta=0, running_mean=0, running_var=1
    g1, be1 = jnp.ones(in_ch, jnp.float32), jnp.zeros(in_ch, jnp.float32)
    m1, v1 = jnp.zeros(in_ch, jnp.float32), jnp.ones(in_ch, jnp.float32)
    g2, be2 = jnp.ones(out_ch, jnp.float32), jnp.zeros(out_ch, jnp.float32)
    m2, v2 = jnp.zeros(out_ch, jnp.float32), jnp.ones(out_ch, jnp.float32)

    params = (w1, b1, g1, be1, m1, v1, w2, b2, g2, be2, m2, v2)

    out = jax.block_until_ready(double_conv(x, params))
    ref = jax.block_until_ready(reference(x, params))

    assert out.shape == (N, out_ch, H, W), out.shape
    err = float(jnp.max(jnp.abs(out - ref)))
    assert jnp.allclose(out, ref, atol=1e-3, rtol=1e-3), f"max abs err = {err}"
    print("KERNEL_OK")
</pallas_src>

<mosaic_0001>
module attributes {stable_mosaic.version = 11 : i64} {
  func.func @_double_conv_kernel(%arg0: i32, %arg1: memref<1x4x326xf32, #tpu.memory_space<vmem>>, %arg2: memref<9x4x4xf32, #tpu.memory_space<vmem>>, %arg3: memref<8x4xf32, #tpu.memory_space<vmem>>, %arg4: memref<4x1xf32, #tpu.memory_space<vmem>>, %arg5: memref<4x1xf32, #tpu.memory_space<vmem>>, %arg6: memref<8x1xf32, #tpu.memory_space<vmem>>, %arg7: memref<8x1xf32, #tpu.memory_space<vmem>>, %arg8: memref<1x8x288xf32, #tpu.memory_space<vmem>>) attributes {dimension_semantics = [#tpu.dimension_semantics<parallel>], iteration_bounds = array<i64: 2>, scalar_prefetch = 0 : i64, scratch_operands = 0 : i64, tpu.core_type = #tpu.core_type<tc>, window_params = [{transform_indices = @transform_0, window_bounds = array<i64: 1, 4, 326>}, {pipeline_mode = #tpu.pipeline_mode<synchronous>, transform_indices = @transform_1, window_bounds = array<i64: 9, 4, 4>}, {pipeline_mode = #tpu.pipeline_mode<synchronous>, transform_indices = @transform_2, window_bounds = array<i64: 8, 4>}, {pipeline_mode = #tpu.pipeline_mode<synchronous>, transform_indices = @transform_3, window_bounds = array<i64: 4, 1>}, {pipeline_mode = #tpu.pipeline_mode<synchronous>, transform_indices = @transform_4, window_bounds = array<i64: 4, 1>}, {pipeline_mode = #tpu.pipeline_mode<synchronous>, transform_indices = @transform_5, window_bounds = array<i64: 8, 1>}, {pipeline_mode = #tpu.pipeline_mode<synchronous>, transform_indices = @transform_6, window_bounds = array<i64: 8, 1>}, {transform_indices = @transform_7, window_bounds = array<i64: 1, 8, 288>}]} {
    %c0 = arith.constant 0 : index
    %c0_0 = arith.constant 0 : index
    %0 = vector.load %arg4[%c0, %c0_0] : memref<4x1xf32, #tpu.memory_space<vmem>>, vector<4x1xf32>
    %c0_1 = arith.constant 0 : index
    %c0_2 = arith.constant 0 : index
    %1 = vector.load %arg5[%c0_1, %c0_2] : memref<4x1xf32, #tpu.memory_space<vmem>>, vector<4x1xf32>
    %c0_3 = arith.constant 0 : index
    %c0_4 = arith.constant 0 : index
    %2 = vector.load %arg6[%c0_3, %c0_4] : memref<8x1xf32, #tpu.memory_space<vmem>>, vector<8x1xf32>
    %c0_5 = arith.constant 0 : index
    %c0_6 = arith.constant 0 : index
    %3 = vector.load %arg7[%c0_5, %c0_6] : memref<8x1xf32, #tpu.memory_space<vmem>>, vector<8x1xf32>
    %c0_7 = arith.constant 0 : index
    %c0_8 = arith.constant 0 : index
    %4 = vector.load %arg3[%c0_7, %c0_8] : memref<8x4xf32, #tpu.memory_space<vmem>>, vector<8x4xf32>
    %c0_9 = arith.constant 0 : index
    %c0_10 = arith.constant 0 : index
    %c0_11 = arith.constant 0 : index
    %5 = vector.load %arg1[%c0_9, %c0_10, %c0_11] : memref<1x4x326xf32, #tpu.memory_space<vmem>>, vector<1x4x326xf32>
    %6 = vector.shape_cast %5 : vector<1x4x326xf32> to vector<4x326xf32>
    %cst = arith.constant 0.000000e+00 : f32
    %7 = vector.broadcast %cst : f32 to vector<4x288xf32>
    %8 = vector.extract_strided_slice %6 {offsets = [0, 0], sizes = [4, 288], strides = [1, 1]} : vector<4x326xf32> to vector<4x288xf32>
    %c0_12 = arith.constant 0 : index
    %c0_13 = arith.constant 0 : index
    %c0_14 = arith.constant 0 : index
    %9 = vector.load %arg2[%c0_12, %c0_13, %c0_14] : memref<9x4x4xf32, #tpu.memory_space<vmem>>, vector<1x4x4xf32>
    %10 = vector.shape_cast %9 : vector<1x4x4xf32> to vector<4x4xf32>
    %cst_15 = arith.constant dense<0.000000e+00> : vector<4x288xf32>
    %11 = tpu.matmul %10, %8, %cst_15 {dimension_numbers = #tpu.dot_dimension_numbers<[1], [0], [0], [1], [0, 0, 1, 1], [], []>, precision = #tpu.contract_precision<fp32>} : vector<4x4xf32>, vector<4x288xf32>, vector<4x288xf32> -> vector<4x288xf32>
    %12 = arith.addf %7, %11 : vector<4x288xf32>
    %13 = vector.extract_strided_slice %6 {offsets = [0, 1], sizes = [4, 288], strides = [1, 1]} : vector<4x326xf32> to vector<4x288xf32>
    %c1 = arith.constant 1 : index
    %c0_16 = arith.constant 0 : index
    %c0_17 = arith.constant 0 : index
    %14 = vector.load %arg2[%c1, %c0_16, %c0_17] : memref<9x4x4xf32, #tpu.memory_space<vmem>>, vector<1x4x4xf32>
    %15 = vector.shape_cast %14 : vector<1x4x4xf32> to vector<4x4xf32>
    %cst_18 = arith.constant dense<0.000000e+00> : vector<4x288xf32>
    %16 = tpu.matmul %15, %13, %cst_18 {dimension_numbers = #tpu.dot_dimension_numbers<[1], [0], [0], [1], [0, 0, 1, 1], [], []>, precision = #tpu.contract_precision<fp32>} : vector<4x4xf32>, vector<4x288xf32>, vector<4x288xf32> -> vector<4x288xf32>
    %17 = arith.addf %12, %16 : vector<4x288xf32>
    %18 = vector.extract_strided_slice %6 {offsets = [0, 2], sizes = [4, 288], strides = [1, 1]} : vector<4x326xf32> to vector<4x288xf32>
    %c2 = arith.constant 2 : index
    %c0_19 = arith.constant 0 : index
    %c0_20 = arith.constant 0 : index
    %19 = vector.load %arg2[%c2, %c0_19, %c0_20] : memref<9x4x4xf32, #tpu.memory_space<vmem>>, vector<1x4x4xf32>
    %20 = vector.shape_cast %19 : vector<1x4x4xf32> to vector<4x4xf32>
    %cst_21 = arith.constant dense<0.000000e+00> : vector<4x288xf32>
    %21 = tpu.matmul %20, %18, %cst_21 {dimension_numbers = #tpu.dot_dimension_numbers<[1], [0], [0], [1], [0, 0, 1, 1], [], []>, precision = #tpu.contract_precision<fp32>} : vector<4x4xf32>, vector<4x288xf32>, vector<4x288xf32> -> vector<4x288xf32>
    %22 = arith.addf %17, %21 : vector<4x288xf32>
    %23 = vector.extract_strided_slice %6 {offsets = [0, 18], sizes = [4, 288], strides = [1, 1]} : vector<4x326xf32> to vector<4x288xf32>
    %c3 = arith.constant 3 : index
    %c0_22 = arith.constant 0 : index
    %c0_23 = arith.constant 0 : index
    %24 = vector.load %arg2[%c3, %c0_22, %c0_23] : memref<9x4x4xf32, #tpu.memory_space<vmem>>, vector<1x4x4xf32>
    %25 = vector.shape_cast %24 : vector<1x4x4xf32> to vector<4x4xf32>
    %cst_24 = arith.constant dense<0.000000e+00> : vector<4x288xf32>
    %26 = tpu.matmul %25, %23, %cst_24 {dimension_numbers = #tpu.dot_dimension_numbers<[1], [0], [0], [1], [0, 0, 1, 1], [], []>, precision = #tpu.contract_precision<fp32>} : vector<4x4xf32>, vector<4x288xf32>, vector<4x288xf32> -> vector<4x288xf32>
    %27 = arith.addf %22, %26 : vector<4x288xf32>
    %28 = vector.extract_strided_slice %6 {offsets = [0, 19], sizes = [4, 288], strides = [1, 1]} : vector<4x326xf32> to vector<4x288xf32>
    %c4 = arith.constant 4 : index
    %c0_25 = arith.constant 0 : index
    %c0_26 = arith.constant 0 : index
    %29 = vector.load %arg2[%c4, %c0_25, %c0_26] : memref<9x4x4xf32, #tpu.memory_space<vmem>>, vector<1x4x4xf32>
    %30 = vector.shape_cast %29 : vector<1x4x4xf32> to vector<4x4xf32>
    %cst_27 = arith.constant dense<0.000000e+00> : vector<4x288xf32>
    %31 = tpu.matmul %30, %28, %cst_27 {dimension_numbers = #tpu.dot_dimension_numbers<[1], [0], [0], [1], [0, 0, 1, 1], [], []>, precision = #tpu.contract_precision<fp32>} : vector<4x4xf32>, vector<4x288xf32>, vector<4x288xf32> -> vector<4x288xf32>
    %32 = arith.addf %27, %31 : vector<4x288xf32>
    %33 = vector.extract_strided_slice %6 {offsets = [0, 20], sizes = [4, 288], strides = [1, 1]} : vector<4x326xf32> to vector<4x288xf32>
    %c5 = arith.constant 5 : index
    %c0_28 = arith.constant 0 : index
    %c0_29 = arith.constant 0 : index
    %34 = vector.load %arg2[%c5, %c0_28, %c0_29] : memref<9x4x4xf32, #tpu.memory_space<vmem>>, vector<1x4x4xf32>
    %35 = vector.shape_cast %34 : vector<1x4x4xf32> to vector<4x4xf32>
    %cst_30 = arith.constant dense<0.000000e+00> : vector<4x288xf32>
    %36 = tpu.matmul %35, %33, %cst_30 {dimension_numbers = #tpu.dot_dimension_numbers<[1], [0], [0], [1], [0, 0, 1, 1], [], []>, precision = #tpu.contract_precision<fp32>} : vector<4x4xf32>, vector<4x288xf32>, vector<4x288xf32> -> vector<4x288xf32>
    %37 = arith.addf %32, %36 : vector<4x288xf32>
    %38 = vector.extract_strided_slice %6 {offsets = [0, 36], sizes = [4, 288], strides = [1, 1]} : vector<4x326xf32> to vector<4x288xf32>
    %c6 = arith.constant 6 : index
    %c0_31 = arith.constant 0 : index
    %c0_32 = arith.constant 0 : index
    %39 = vector.load %arg2[%c6, %c0_31, %c0_32] : memref<9x4x4xf32, #tpu.memory_space<vmem>>, vector<1x4x4xf32>
    %40 = vector.shape_cast %39 : vector<1x4x4xf32> to vector<4x4xf32>
    %cst_33 = arith.constant dense<0.000000e+00> : vector<4x288xf32>
    %41 = tpu.matmul %40, %38, %cst_33 {dimension_numbers = #tpu.dot_dimension_numbers<[1], [0], [0], [1], [0, 0, 1, 1], [], []>, precision = #tpu.contract_precision<fp32>} : vector<4x4xf32>, vector<4x288xf32>, vector<4x288xf32> -> vector<4x288xf32>
    %42 = arith.addf %37, %41 : vector<4x288xf32>
    %43 = vector.extract_strided_slice %6 {offsets = [0, 37], sizes = [4, 288], strides = [1, 1]} : vector<4x326xf32> to vector<4x288xf32>
    %c7 = arith.constant 7 : index
    %c0_34 = arith.constant 0 : index
    %c0_35 = arith.constant 0 : index
    %44 = vector.load %arg2[%c7, %c0_34, %c0_35] : memref<9x4x4xf32, #tpu.memory_space<vmem>>, vector<1x4x4xf32>
    %45 = vector.shape_cast %44 : vector<1x4x4xf32> to vector<4x4xf32>
    %cst_36 = arith.constant dense<0.000000e+00> : vector<4x288xf32>
    %46 = tpu.matmul %45, %43, %cst_36 {dimension_numbers = #tpu.dot_dimension_numbers<[1], [0], [0], [1], [0, 0, 1, 1], [], []>, precision = #tpu.contract_precision<fp32>} : vector<4x4xf32>, vector<4x288xf32>, vector<4x288xf32> -> vector<4x288xf32>
    %47 = arith.addf %42, %46 : vector<4x288xf32>
    %48 = vector.extract_strided_slice %6 {offsets = [0, 38], sizes = [4, 288], strides = [1, 1]} : vector<4x326xf32> to vector<4x288xf32>
    %c8 = arith.constant 8 : index
    %c0_37 = arith.constant 0 : index
    %c0_38 = arith.constant 0 : index
    %49 = vector.load %arg2[%c8, %c0_37, %c0_38] : memref<9x4x4xf32, #tpu.memory_space<vmem>>, vector<1x4x4xf32>
    %50 = vector.shape_cast %49 : vector<1x4x4xf32> to vector<4x4xf32>
    %cst_39 = arith.constant dense<0.000000e+00> : vector<4x288xf32>
    %51 = tpu.matmul %50, %48, %cst_39 {dimension_numbers = #tpu.dot_dimension_numbers<[1], [0], [0], [1], [0, 0, 1, 1], [], []>, precision = #tpu.contract_precision<fp32>} : vector<4x4xf32>, vector<4x288xf32>, vector<4x288xf32> -> vector<4x288xf32>
    %52 = arith.addf %47, %51 : vector<4x288xf32>
    %53 = vector.broadcast %0 : vector<4x1xf32> to vector<4x288xf32>
    %54 = arith.mulf %52, %53 : vector<4x288xf32>
    %55 = vector.broadcast %1 : vector<4x1xf32> to vector<4x288xf32>
    %56 = arith.addf %54, %55 : vector<4x288xf32>
    %cst_40 = arith.constant 0.000000e+00 : f32
    %57 = vector.broadcast %cst_40 : f32 to vector<4x288xf32>
    %58 = arith.cmpf ogt, %56, %57 : vector<4x288xf32>
    %cst_41 = arith.constant 2.000000e-01 : f32
    %59 = vector.broadcast %cst_41 : f32 to vector<4x288xf32>
    %60 = arith.mulf %59, %56 : vector<4x288xf32>
    %61 = arith.select %58, %56, %60 : vector<4x288xi1>, vector<4x288xf32>
    %cst_42 = arith.constant dense<0.000000e+00> : vector<8x288xf32>
    %62 = tpu.matmul %4, %61, %cst_42 {dimension_numbers = #tpu.dot_dimension_numbers<[1], [0], [0], [1], [0, 0, 1, 1], [], []>, precision = #tpu.contract_precision<fp32>} : vector<8x4xf32>, vector<4x288xf32>, vector<8x288xf32> -> vector<8x288xf32>
    %63 = vector.broadcast %2 : vector<8x1xf32> to vector<8x288xf32>
    %64 = arith.mulf %62, %63 : vector<8x288xf32>
    %65 = vector.broadcast %3 : vector<8x1xf32> to vector<8x288xf32>
    %66 = arith.addf %64, %65 : vector<8x288xf32>
    %cst_43 = arith.constant 0.000000e+00 : f32
    %67 = vector.broadcast %cst_43 : f32 to vector<8x288xf32>
    %68 = arith.cmpf ogt, %66, %67 : vector<8x288xf32>
    %cst_44 = arith.constant 2.000000e-01 : f32
    %69 = vector.broadcast %cst_44 : f32 to vector<8x288xf32>
    %70 = arith.mulf %69, %66 : vector<8x288xf32>
    %71 = arith.select %68, %66, %70 : vector<8x288xi1>, vector<8x288xf32>
    %c0_45 = arith.constant 0 : index
    %c0_46 = arith.constant 0 : index
    %c0_47 = arith.constant 0 : index
    %72 = vector.load %arg8[%c0_45, %c0_46, %c0_47] : memref<1x8x288xf32, #tpu.memory_space<vmem>>, vector<1x8x288xf32>
    %73 = vector.shape_cast %72 : vector<1x8x288xf32> to vector<8x288xf32>
    %74 = vector.shape_cast %71 : vector<8x288xf32> to vector<1x8x288xf32>
    tpu.vector_store %arg8[%c0_45, %c0_46, %c0_47], %74 {strides = array<i32>} : memref<1x8x288xf32, #tpu.memory_space<vmem>>, vector<1x8x288xf32>,
    return
  }
  func.func @transform_0(%arg0: i32) -> (i32, i32, i32) {
    %c0_i32 = arith.constant 0 : i32
    %c0_i32_0 = arith.constant 0 : i32
    %c0_i32_1 = arith.constant 0 : i32
    return %arg0, %c0_i32, %c0_i32_0 : i32, i32, i32
  }
  func.func @transform_1(%arg0: i32) -> (i32, i32, i32) {
    %c0_i32 = arith.constant 0 : i32
    %c0_i32_0 = arith.constant 0 : i32
    %c0_i32_1 = arith.constant 0 : i32
    %c0_i32_2 = arith.constant 0 : i32
    return %c0_i32, %c0_i32_0, %c0_i32_1 : i32, i32, i32
  }
  func.func @transform_2(%arg0: i32) -> (i32, i32) {
    %c0_i32 = arith.constant 0 : i32
    %c0_i32_0 = arith.constant 0 : i32
    %c0_i32_1 = arith.constant 0 : i32
    return %c0_i32, %c0_i32_0 : i32, i32
  }
  func.func @transform_3(%arg0: i32) -> (i32, i32) {
    %c0_i32 = arith.constant 0 : i32
    %c0_i32_0 = arith.constant 0 : i32
    %c0_i32_1 = arith.constant 0 : i32
    return %c0_i32, %c0_i32_0 : i32, i32
  }
  func.func @transform_4(%arg0: i32) -> (i32, i32) {
    %c0_i32 = arith.constant 0 : i32
    %c0_i32_0 = arith.constant 0 : i32
    %c0_i32_1 = arith.constant 0 : i32
    return %c0_i32, %c0_i32_0 : i32, i32
  }
  func.func @transform_5(%arg0: i32) -> (i32, i32) {
    %c0_i32 = arith.constant 0 : i32
    %c0_i32_0 = arith.constant 0 : i32
    %c0_i32_1 = arith.constant 0 : i32
    return %c0_i32, %c0_i32_0 : i32, i32
  }
  func.func @transform_6(%arg0: i32) -> (i32, i32) {
    %c0_i32 = arith.constant 0 : i32
    %c0_i32_0 = arith.constant 0 : i32
    %c0_i32_1 = arith.constant 0 : i32
    return %c0_i32, %c0_i32_0 : i32, i32
  }
  func.func @transform_7(%arg0: i32) -> (i32, i32, i32) {
    %c0_i32 = arith.constant 0 : i32
    %c0_i32_0 = arith.constant 0 : i32
    %c0_i32_1 = arith.constant 0 : i32
    return %arg0, %c0_i32, %c0_i32_0 : i32, i32, i32
  }
}

</mosaic_0001>

<bundles_post_ra>
// kernel: tpu_custom_call.1
= control target key start
LH: loop header
LB: loop body
LE: loop exit
PB: predicated region body
PF: predicated region fallthrough
CT: control target
= control target key end

     0   :  { %12 = vsyncpa [#allocation3], 0  ;;  %s11370_s0 = inlined_call_operand.vmem [shape: f32[2,4,326], index: 0, kind: input, shape index: {}]   ;;  %s11371_s1 = inlined_call_operand.vmem [shape: f32[9,4,4], index: 1, kind: input, shape index: {}]   ;;  %s11372_s2 = inlined_call_operand.vmem [shape: f32[8,4], index: 2, kind: input, shape index: {}]   ;;  %s11373_s3 = inlined_call_operand.vmem [shape: f32[4,1], index: 3, kind: input, shape index: {}]   ;;  %s11374_s4 = inlined_call_operand.vmem [shape: f32[4,1], index: 4, kind: input, shape index: {}]   ;;  %s11375_s5 = inlined_call_operand.vmem [shape: f32[8,1], index: 5, kind: input, shape index: {}]   ;;  %s11376_s6 = inlined_call_operand.vmem [shape: f32[8,1], index: 6, kind: input, shape index: {}]   ;;  %s11377_s7 = inlined_call_operand.hbm [shape: f32[2,8,288], index: 7, kind: output, shape index: {}]  }
   0x1   :  { %14 = vsyncpa [#allocation3 + $0x1], 0  ;;  %s10570_s24 = smov 0   ;;  %s10572_s25 = smov 0  }
   0x2   :  { %s10574_s26 = smov 0   ;;  %s10576_s27 = smov 0  }
   0x3 LB: > { %s10591_s28 = sadd.s32 4294967295, %s10516_s27   ;;  %s9730_s29 = sadd.s32 4294967294, %s10516_s27   ;;  %s10516_s27 = sphi %s10576_s27, %s11383_s27   ;;  %s10512_s26 = sphi %s10574_s26, %s11382_s26   ;;  %s10508_s25 = sphi %s10572_s25, %s11381_s25   ;;  %s10504_s24 = sphi %s10570_s24, %s11380_s24  }
   0x4   : > { %s10595_s30 = sadd.s32 1, %s10516_s27   ;;  %s179_s8 = sadd.s32 1, %s10512_s26 }
   0x5   : > { %s176_s9 = ssub.s32 %s10516_s27, %s10595_s30  ;;  %p189_p0 = scmp.ne.s32.totalorder %s10512_s26, %s10508_s25 }
   0x6   : > { %p177_p1 = scmp.eq.s32.totalorder %s176_s9, 0  ;;  %p190_p2 = scmp.eq.s32.totalorder %s10591_s28, 1 }
   0x7   : > { %p195_p3 = scmp.ne.s32.totalorder %s10508_s25, %s10504_s24  ;;  %p196_p4 = scmp.eq.s32.totalorder %s9730_s29, 1 }
   0x8   : > { %s10606_s10 = scalar_select %p177_p1, %s10512_s26, %s179_s8  }
   0x9   : > { %p10608_p5 = por %p190_p2, %p189_p0  ;;  %p10612_p6 = por %p196_p4, %p195_p3 }
   0xa   : > { %p9733_p7 = scmp.ge.s32.totalorder %s10516_s27, 1  ;;  %p240_p8 = scmp.lt.s32.totalorder %s10516_s27, 3 }
   0xc   : > { %p241_p9 = pnand %p9733_p7, %p240_p8 }
   0xd   : > { %p272_p10 = scmp.lt.s32.totalorder (!%p241_p9), %s10591_s28, 1  ;;  %v10518_v0 = vmov (!%p241_p9), 0.0   ;;  %vm10519_vm0 = vmmov (!%p241_p9), 0   ;;  %s10520_s18 = smov (!%p241_p9), 127   ;;  %v9735_v4 = vld [vmem:[%s11371_s1 + $0x4] sm:$0xf] (!%p241_p9) }
   0xe   : > { %244 = sbr.rel (%p241_p9) target bundleno = 1077 (0x435), region = 48  ;;  %9866 = vmatprep.subr.mxu1 (!%p241_p9), %v10518_v0  ;;  %376 = vmatprep.mubr.f32.mxu0 (!%p241_p9), %v10518_v0  ;;  %s10521_s19 = smov (!%p241_p9), 126   ;;  %vm299_vm1 = vcmask (!%p241_p9), 31744   ;;  %vm296_vm2 = vcmask (!%p241_p9), 1039360   ;;  %vm303_vm3 = vcmask (!%p241_p9), 1043456   ;;  %vm2149_vm4 = vcmask (!%p241_p9), 1031168  }
   0xf   : > { %9868 = vmatprep.mubr.msk.f32.mxu1 (!%p241_p9), %vm10519_vm0, %v10518_v0  ;;  %s10522_s20 = smov (!%p241_p9), 110   ;;  %s10523_s21 = smov (!%p241_p9), 109   ;;  %v301_v5 = vsel (!%p241_p9), %vm299_vm1, %v9735_v4, 0  ;;  %v284_v35 = vld [vmem:[%s11371_s1] sm:$0xf] (!%p241_p9)  ;;  %vm3083_vm5 = vcmask (!%p241_p9), 900096  }
  0x10   : > { %v10651_v6 = vand.u32 (!%p241_p9), 4294901760, %v301_v5  ;;  %s10524_s29 = smov (!%p241_p9), 108   ;;  %v1222_v37 = vsel (!%p241_p9), %vm299_vm1, %v284_v35, 0  ;;  %v9736_v4 = vld [vmem:[%s11371_s1 + $0x8] sm:$0xf] (!%p241_p9)  ;;  %s10526_s16 = smov (!%p241_p9), 91  }
  0x11   : > { %v10704_v39 = vand.u32 (!%p241_p9), 4294901760, %v1222_v37  ;;  %vm4017_vm6 = vcmask (!%p241_p9), 891904   ;;  %vm4951_vm7 = vcmask (!%p241_p9), 883712   ;;  %vm5885_vm8 = vcmask (!%p241_p9), 752640   ;;  %s269_s9 = sand.u32 (!%p241_p9), 1, %s10508_s25  }
  0x12   : > { %v378_v7 = vsub.f32 (!%p241_p9), %v301_v5, %v10651_v6  ;;  %vm6819_vm9 = vcmask (!%p241_p9), 744448   ;;  %vm7753_vm10 = vcmask (!%p241_p9), 736256   ;;  %vm9654_vm15 = vcmask (!%p241_p9), 261120  }
  0x13   : > { %v1298_v44 = vsub.f32 (!%p241_p9), %v1222_v37, %v10704_v39 }
  0x14   : > { %v10657_v8 = vand.u32 (!%p241_p9), 4294901760, %v378_v7 }
  0x15   : > { %s273_s13 = scalar_select %p272_p10, %s10591_s28, 1  ;;  %v1299_v48 = vand.u32 4294901760, %v1298_v44 }
  0x16   : > { %v380_v12 = vsub.f32 %v378_v7, %v10657_v8 }
  0x17   : > { %s10399_s14 = smul.u32 12, %s273_s13  ;;  %s10525_s13 = smov 92   ;;  %v1300_v52 = vsub.f32 %v1298_v44, %v1299_v48 }
  0x18   : > { %v381_v19 = vand.u32 4294901760, %v380_v12 }
  0x19   : > { %s276_s17 = scalar_lea.vmem %s11370_s0, %s10399_s14  ;;  %v1301_v56 = vand.u32 4294901760, %v1300_v52  ;;  %s10400_s14 = smul.u32 384, %s10591_s28 }
  0x1a   : > { %v10627_v1 = vld [vmem:[%s276_s17] sm:$0xff]  ;;  %v10635_v3 = vld [vmem:[%s276_s17 + $0x8] sm:$0xf]  ;;  %s9657_s28 = scalar_lea.sflag [#allocation3], %s269_s9 }
  0x1b   : > { %290 = vrot.lane.b32.xlu1 %v10627_v1, %s10520_s18  ;;  %v10632_v2 = vcombine.high %v10627_v1, %v10627_v1  ;;  %v1228_v38 = vsel %vm303_vm3, %v10635_v3, 0  ;;  %v1224_v40 = vsel %vm303_vm3, %v10627_v1, 0 }
  0x1c   : > { %v10711_v42 = vand.u32 4294901760, %v1228_v38  ;;  %v10715_v43 = vand.u32 4294901760, %v1224_v40 }
  0x1d   : > { %292 = vrot.lane.b32.xlu0 %v10632_v2, %s10520_s18  ;;  %v1226_v34 = vsel %vm303_vm3, %v10632_v2, 0 }
  0x1e   : > { %v10694_v36 = vand.u32 4294901760, %v1226_v34  ;;  %v1773_v46 = vsub.f32 %v1228_v38, %v10711_v42  ;;  %v1315_v47 = vsub.f32 %v1224_v40, %v10715_v43 }
  0x1f   : > { %2145 = vrot.lane.b32.xlu1 %v10632_v2, %s10521_s19 }
  0x20   : > { %v10709_v41 = vsub.f32 %v1226_v34, %v10694_v36  ;;  %v1774_v50 = vand.u32 4294901760, %v1773_v46  ;;  %v1316_v51 = vand.u32 4294901760, %v1315_v47  ;;  %v9737_v34 = vld [vmem:[%s11371_s1 + $0xc] sm:$0xf] }
  0x21   : > { %294 = vrot.lane.b32.xlu0 %v10635_v3, %s10520_s18  ;;  %v3087_v37 = vsel %vm299_vm1, %v9737_v34, 0 }
  0x22   : > { %v1310_v45 = vand.u32 4294901760, %v10709_v41  ;;  %v1775_v54 = vsub.f32 %v1773_v46, %v1774_v50  ;;  %v1317_v55 = vsub.f32 %v1315_v47, %v1316_v51 }
  0x23   : > { %2143 = vrot.lane.b32.xlu1 %v10627_v1, %s10521_s19 }
  0x24   : > { %v1311_v49 = vsub.f32 %v10709_v41, %v1310_v45  ;;  %v1776_v57 = vand.u32 4294901760, %v1775_v54  ;;  %v1318_v58 = vand.u32 4294901760, %v1317_v55 }
  0x25   : > { %2147 = vrot.lane.b32.xlu0 %v10635_v3, %s10521_s19  ;;  %s10527_s19 = smov 90  }
  0x26   : > { %v1312_v53 = vand.u32 4294901760, %v1311_v49 }
  0x27   : > { %3081 = vrot.lane.b32.xlu1 %v10635_v3, %s10522_s20 }
  0x29   : > { %3079 = vrot.lane.b32.xlu0 %v10632_v2, %s10522_s20 }
  0x2b   : > { %4013 = vrot.lane.b32.xlu1 %v10632_v2, %s10523_s21 }
  0x2d   : > { %3077 = vrot.lane.b32.xlu0 %v10627_v1, %s10522_s20 }
  0x2f   : > { %4011 = vrot.lane.b32.xlu1 %v10627_v1, %s10523_s21 }
  0x31   : > { %4015 = vrot.lane.b32.xlu0 %v10635_v3, %s10523_s21  ;;  %s10529_s21 = smov [#allocation2]  }
  0x32   : > { %s10458_s22 = sshll.u32 %s10529_s21, 4  ;;  %s10459_s22 = int_to_ptr.vmem [resolvable:$false] %s10458_s22 }
  0x33   : > { %4949 = vrot.lane.b32.xlu1 %v10635_v3, %s10524_s29  ;;  %s10460_s23 = scalar_lea.vmem %s10459_s22, 768 }
  0x35   : > { %4947 = vrot.lane.b32.xlu0 %v10632_v2, %s10524_s29 }
  0x37   : > { %5881 = vrot.lane.b32.xlu1 %v10632_v2, %s10525_s13 }
  0x39   : > { %4945 = vrot.lane.b32.xlu0 %v10627_v1, %s10524_s29 }
  0x3b   : > { %5879 = vrot.lane.b32.xlu1 %v10627_v1, %s10525_s13 }
  0x3d   : > { %5883 = vrot.lane.b32.xlu0 %v10635_v3, %s10525_s13  ;;  %s10398_s13 = smul.u32 24, %s269_s9 }
  0x3f   : > { %6817 = vrot.lane.b32.xlu1 %v10635_v3, %s10526_s16  ;;  %s271_s15 = scalar_lea.vmem [#allocation2], %s10398_s13 }
  0x41   : > { %6815 = vrot.lane.b32.xlu0 %v10632_v2, %s10526_s16 }
  0x43   : > { %7749 = vrot.lane.b32.xlu1 %v10632_v2, %s10527_s19 }
  0x45   : > { %6813 = vrot.lane.b32.xlu0 %v10627_v1, %s10526_s16  ;;  %s9671_s16 = sshll.u32 %s271_s15, 4  ;;  %s11328_s16 = int_to_ptr.vmem [resolvable:$true] %s9671_s16 }
  0x46   : > { %s10454_s20 = scalar_lea.vmem %s11328_s16, 384  ;;  %p10461_p0 = scmp.lt.s32.totalorder %s11328_s16, %s10459_s22 }
  0x47   : > { %7747 = vrot.lane.b32.xlu1 %v10627_v1, %s10527_s19  ;;  %p10455_p11 = scmp.ne.s32.totalorder %s11328_s16, %s10454_s20  ;;  %p10462_p1 = scmp.lt.s32.totalorder %s10460_s23, %s10454_s20 }
  0x49   : > { %7751 = vrot.lane.b32.xlu0 %v10635_v3, %s10527_s19  ;;  %s11326_s19 = scalar_lea.hbm %s11377_s7, %s10400_s14  ;;  %p10456_p12 = pnand %p10455_p11, %p10608_p5 }
  0x4a   : > { %p10463_p2 = por %p10462_p1, %p10461_p0 }
  0x4b   : > { %p10457_p13 = pneg %p10456_p12 }
  0x4d   : > { %p10464_p3 = pnand %p10463_p2, %p10457_p13 }
  0x8d   : > { %v291_v9 = vpop.permute.xlu1 %290 }
  0x8f   : > { %v293_v10 = vpop.permute.xlu0 %292 }
  0x90   : > { %v297_v11 = vsel %vm296_vm2, %v291_v9, %v293_v10 }
  0x91   : > { %v304_v13 = vsel %vm303_vm3, %v297_v11, 0  ;;  %v2146_v60 = vpop.permute.xlu1 %2145 }
  0x92   : > { %v10661_v14 = vand.u32 4294901760, %v304_v13 }
  0x93   : > { %v295_v15 = vpop.permute.xlu0 %294 }
  0x94   : > { %v395_v16 = vsub.f32 %v304_v13, %v10661_v14  ;;  %v298_v17 = vsel %vm296_vm2, %v293_v10, %v295_v15  ;;  %v308_v18 = vsel %vm303_vm3, %v295_v15, 0 }
  0x95   : > { %v306_v20 = vsel %vm303_vm3, %v298_v17, 0  ;;  %v10666_v21 = vand.u32 4294901760, %v308_v18  ;;  %v2144_v63 = vpop.permute.xlu1 %2143 }
  0x96   : > { %v310_v22 = vand.u32 4294901760, %v306_v20  ;;  %v396_v23 = vand.u32 4294901760, %v395_v16 }
  0x97   : > { %v853_v24 = vsub.f32 %v308_v18, %v10666_v21  ;;  %9867 = vmatpush3.msra.mxu1 %v10666_v21  ;;  %v2148_v59 = vpop.permute.xlu0 %2147 }
  0x98   : > { %v389_v25 = vsub.f32 %v306_v20, %v310_v22  ;;  %311 = vmatprep.subr.mxu0 %v310_v22  ;;  %9869 = vmatmul.mubr.f32.vlgmr.msra.gmra.mrb[0].mxu1 %v381_v19  ;;  %v397_v29 = vsub.f32 %v395_v16, %v396_v23  ;;  %v2151_v61 = vsel %vm2149_vm4, %v2146_v60, %v2148_v59 }
  0x99   : > { %v854_v26 = vand.u32 4294901760, %v853_v24  ;;  %313 = vmatpush1.msra.mxu0 %v10661_v14  ;;  %9871 = vmatprep.subr.mxu1 %v10518_v0  ;;  %v2157_v62 = vsel %vm303_vm3, %v2151_v61, 0  ;;  %v9738_v61 = vld [vmem:[%s11371_s1 + $0x10] sm:$0xf] }
  0x9a   : > { %382 = vmatmul.mubr.f32.vlgmr.msra.gmra.mrb[0].mxu0 %v381_v19  ;;  %9873 = vmatprep.mubr.msk.f32.mxu1 %vm10519_vm0, %v10518_v0  ;;  %v390_v27 = vand.u32 4294901760, %v389_v25  ;;  %v398_v33 = vand.u32 4294901760, %v397_v29  ;;  %v10763_v5 = vand.u32 4294901760, %v2157_v62  ;;  %v3082_v29 = vpop.permute.xlu1 %3081 }
  0x9b   : > { %v855_v28 = vsub.f32 %v853_v24, %v854_v26  ;;  %462 = vmatprep.mubr.f32.mxu0 %v10518_v0  ;;  %v3093_v38 = vsel %vm303_vm3, %v3082_v29, 0 }
  0x9c   : > { %v391_v30 = vsub.f32 %v389_v25, %v390_v27  ;;  %v10774_v10 = vsub.f32 %v2157_v62, %v10763_v5 }
  0x9d   : > { %v856_v31 = vand.u32 4294901760, %v855_v28 }
  0x9e   : > { %v392_v32 = vand.u32 4294901760, %v391_v30  ;;  %v2241_v15 = vand.u32 4294901760, %v10774_v10  ;;  %v3080_v30 = vpop.permute.xlu0 %3079 }
  0x9f   : > { %9872 = vmatpush3.msra.mxu1 %v856_v31  ;;  %v3085_v31 = vsel %vm3083_vm5, %v3080_v30, %v3082_v29 }
  0xa0   : > { %393 = vmatprep.subr.mxu0 %v392_v32  ;;  %9874 = vmatmul.mubr.f32.vlgmr.msra.gmra.mrb[0].mxu1 %v10651_v6  ;;  %v2242_v19 = vsub.f32 %v10774_v10, %v2241_v15  ;;  %v3091_v32 = vsel %vm303_vm3, %v3085_v31, 0  ;;  %v9739_v31 = vld [vmem:[%s11371_s1 + $0x14] sm:$0xf] }
  0xa1   : > { %9876 = vmatprep.subr.mxu1 %v10518_v0  ;;  %399 = vmatpush1.msra.mxu0 %v398_v33  ;;  %v10836_v35 = vand.u32 4294901760, %v3091_v32  ;;  %v4955_v34 = vsel %vm299_vm1, %v9739_v31, 0 }
  0xa2   : > { %9877 = vmatpush3.msra.mxu1 %v853_v24  ;;  %464 = vmatmul.mubr.f32.vlgmr.msra.gmra.mrb[0].mxu0 %v10651_v6  ;;  %v3078_v33 = vpop.permute.xlu0 %3077 }
  0xa3   : > { %472 = vmatprep.subr.mxu0 %v389_v25  ;;  %9878 = vmatprep.mubr.msk.f32.mxu1 %vm10519_vm0, %v10518_v0 }
  0xa4   : > { %475 = vmatpush1.msra.mxu0 %v395_v16  ;;  %9881 = vmatprep.subr.mxu1 %v10518_v0 }
  0xa5   : > { %548 = vmatprep.subr.mxu0 %v310_v22  ;;  %538 = vmatprep.mubr.f32.mxu0 %v10518_v0 }
  0xa8   : > { %9879 = vmatmul.mubr.f32.vlgmr.msra.gmra.mrb[0].mxu1 %v378_v7 }
  0xa9   : > { %9882 = vmatpush3.msra.mxu1 %v10666_v21  ;;  %9883 = vmatprep.mubr.msk.f32.mxu1 %vm10519_vm0, %v10518_v0 }
  0xaa   : > { %541 = vmatmul.mubr.f32.vlgmr.msra.gmra.mrb[0].mxu0 %v378_v7  ;;  %9886 = vmatprep.subr.mxu1 %v10518_v0  ;;  %v2153_v7 = vsel %vm299_vm1, %v9736_v4, 0  ;;  %v4021_v4 = vsel %vm299_vm1, %v9738_v61, 0 }
  0xab   : > { %550 = vmatpush1.msra.mxu0 %v10661_v14  ;;  %613 = vmatprep.mubr.f32.mxu0 %v10518_v0  ;;  %v10777_v11 = vand.u32 4294901760, %v2153_v7 }
  0xac   : > { %626 = vmatprep.subr.mxu0 %v390_v27 }
  0xb0   : > { %9884 = vmatmul.mubr.f32.vlgmr.msra.gmra.mrb[0].mxu1 %v10657_v8 }
  0xb1   : > { %9887 = vmatpush3.msra.mxu1 %v854_v26  ;;  %9888 = vmatprep.mubr.msk.f32.mxu1 %vm10519_vm0, %v10518_v0 }
  0xb2   : > { %617 = vmatmul.mubr.f32.vlgmr.msra.gmra.mrb[0].mxu0 %v10657_v8  ;;  %9891 = vmatprep.subr.mxu1 %v10518_v0  ;;  %v2159_v8 = vsel %vm303_vm3, %v2148_v59, 0 }
  0xb3   : > { %630 = vmatpush1.msra.mxu0 %v396_v23  ;;  %693 = vmatprep.mubr.f32.mxu0 %v10518_v0  ;;  %v10779_v12 = vand.u32 4294901760, %v2159_v8  ;;  %v2243_v23 = vand.u32 4294901760, %v2242_v19 }
  0xb4   : > { %702 = vmatprep.subr.mxu0 %v310_v22 }
  0xb5   : > { %v2704_v16 = vsub.f32 %v2159_v8, %v10779_v12  ;;  %v10921_v8 = vand.u32 4294901760, %v4021_v4 }
  0xb7   : > { %v2705_v20 = vand.u32 4294901760, %v2704_v16 }
  0xb8   : > { %9889 = vmatmul.mubr.f32.vlgmr.msra.gmra.mrb[0].mxu1 %v10651_v6 }
  0xb9   : > { %9892 = vmatpush3.msra.mxu1 %v10666_v21  ;;  %9893 = vmatprep.mubr.msk.f32.mxu1 %vm10519_vm0, %v10518_v0  ;;  %v2706_v24 = vsub.f32 %v2704_v16, %v2705_v20 }
  0xba   : > { %695 = vmatmul.mubr.f32.vlgmr.msra.gmra.mrb[0].mxu0 %v10651_v6  ;;  %9896 = vmatprep.subr.mxu1 %v10518_v0 }
  0xbb   : > { %704 = vmatpush1.msra.mxu0 %v10661_v14  ;;  %767 = vmatprep.mubr.f32.mxu0 %v10518_v0  ;;  %v2229_v14 = vsub.f32 %v2153_v7, %v10777_v11  ;;  %v2707_v27 = vand.u32 4294901760, %v2706_v24 }
  0xbc   : > { %1231 = vmatprep.subr.mxu0 %v10694_v36 }
  0xbd   : > { %v2230_v18 = vand.u32 4294901760, %v2229_v14 }
  0xbf   : > { %v2231_v22 = vsub.f32 %v2229_v14, %v2230_v18 }
  0xc0   : > { %9894 = vmatmul.mubr.f32.vlgmr.msra.gmra.mrb[0].mxu1 %v10651_v6 }
  0xc1   : > { %9897 = vmatpush3.msra.mxu1 %v10711_v42  ;;  %9898 = vmatprep.mubr.msk.f32.mxu1 %vm10519_vm0, %v10518_v0  ;;  %v2232_v26 = vand.u32 4294901760, %v2231_v22 }
  0xc2   : > { %769 = vmatmul.mubr.f32.vlgmr.msra.gmra.mrb[0].mxu0 %v10651_v6  ;;  %9901 = vmatprep.subr.mxu1 %v10518_v0  ;;  %v2150_v6 = vsel %vm2149_vm4, %v2144_v63, %v2146_v60 }
  0xc3   : > { %1233 = vmatpush1.msra.mxu0 %v10715_v43  ;;  %1296 = vmatprep.mubr.f32.mxu0 %v10518_v0  ;;  %v2155_v9 = vsel %vm303_vm3, %v2150_v6, 0 }
  0xc4   : > { %1313 = vmatprep.subr.mxu0 %v1312_v53  ;;  %v10783_v13 = vand.u32 4294901760, %v2155_v9 }
  0xc6   : > { %v10795_v17 = vsub.f32 %v2155_v9, %v10783_v13 }
  0xc8   : > { %9899 = vmatmul.mubr.f32.vlgmr.msra.gmra.mrb[0].mxu1 %v1301_v56  ;;  %v2247_v21 = vand.u32 4294901760, %v10795_v17 }
  0xc9   : > { %9902 = vmatpush3.msra.mxu1 %v1776_v57  ;;  %9903 = vmatprep.mubr.msk.f32.mxu1 %vm10519_vm0, %v10518_v0  ;;  %v4014_v57 = vpop.permute.xlu1 %4013 }
  0xca   : > { %1302 = vmatmul.mubr.f32.vlgmr.msra.gmra.mrb[0].mxu0 %v1301_v56  ;;  %9906 = vmatprep.subr.mxu1 %v10518_v0  ;;  %v2248_v25 = vsub.f32 %v10795_v17, %v2247_v21  ;;  %v4016_v56 = vpop.permute.xlu0 %4015 }
  0xcb   : > { %1319 = vmatpush1.msra.mxu0 %v1318_v58  ;;  %1382 = vmatprep.mubr.f32.mxu0 %v10518_v0  ;;  %v4019_v58 = vsel %vm4017_vm6, %v4014_v57, %v4016_v56 }
  0xcc   : > { %1392 = vmatprep.subr.mxu0 %v10709_v41  ;;  %v2249_v28 = vand.u32 4294901760, %v2248_v25  ;;  %v10850_v41 = vand.u32 4294901760, %v3087_v37  ;;  %v4025_v59 = vsel %vm303_vm3, %v4019_v58, 0  ;;  %v9740_v58 = vld [vmem:[%s11371_s1 + $0x18] sm:$0xf] }
  0xcd   : > { %v4012_v60 = vpop.permute.xlu1 %4011  ;;  %v10909_v62 = vand.u32 4294901760, %v4025_v59  ;;  %v5889_v61 = vsel %vm299_vm1, %v9740_v58, 0 }
  0xce   : > { %v4018_v63 = vsel %vm4017_vm6, %v4012_v60, %v4014_v57 }
  0xcf   : > { %v4023_v6 = vsel %vm303_vm3, %v4018_v63, 0  ;;  %v4108_v7 = vsub.f32 %v4025_v59, %v10909_v62 }
  0xd0   : > { %9904 = vmatmul.mubr.f32.vlgmr.msra.gmra.mrb[0].mxu1 %v10704_v39 }
  0xd1   : > { %9907 = vmatpush3.msra.mxu1 %v1773_v46  ;;  %9908 = vmatprep.mubr.msk.f32.mxu1 %vm10519_vm0, %v10518_v0 }
  0xd2   : > { %1384 = vmatmul.mubr.f32.vlgmr.msra.gmra.mrb[0].mxu0 %v10704_v39  ;;  %9911 = vmatprep.subr.mxu1 %v10518_v0 }
  0xd3   : > { %1395 = vmatpush1.msra.mxu0 %v1315_v47  ;;  %1458 = vmatprep.mubr.f32.mxu0 %v10518_v0 }
  0xd4   : > { %1468 = vmatprep.subr.mxu0 %v10694_v36 }
  0xd8   : > { %9909 = vmatmul.mubr.f32.vlgmr.msra.gmra.mrb[0].mxu1 %v1298_v44 }
  0xd9   : > { %9912 = vmatpush3.msra.mxu1 %v10711_v42  ;;  %9913 = vmatprep.mubr.msk.f32.mxu1 %vm10519_vm0, %v10518_v0 }
  0xda   : > { %1461 = vmatmul.mubr.f32.vlgmr.msra.gmra.mrb[0].mxu0 %v1298_v44  ;;  %9916 = vmatprep.subr.mxu1 %v10518_v0  ;;  %v3163_v44 = vsub.f32 %v3087_v37, %v10850_v41 }
  0xdb   : > { %1470 = vmatpush1.msra.mxu0 %v10715_v43  ;;  %1533 = vmatprep.mubr.f32.mxu0 %v10518_v0 }
  0xdc   : > { %1546 = vmatprep.subr.mxu0 %v1310_v45  ;;  %v3164_v3 = vand.u32 4294901760, %v3163_v44 }
  0xe0   : > { %9914 = vmatmul.mubr.f32.vlgmr.msra.gmra.mrb[0].mxu1 %v1299_v48 }
  0xe1   : > { %9917 = vmatpush3.msra.mxu1 %v1774_v50  ;;  %9918 = vmatprep.mubr.msk.f32.mxu1 %vm10519_vm0, %v10518_v0  ;;  %v3165_v50 = vsub.f32 %v3163_v44, %v3164_v3 }
  0xe2   : > { %1537 = vmatmul.mubr.f32.vlgmr.msra.gmra.mrb[0].mxu0 %v1299_v48  ;;  %9921 = vmatprep.subr.mxu1 %v10518_v0 }
  0xe3   : > { %1550 = vmatpush1.msra.mxu0 %v1316_v51  ;;  %1613 = vmatprep.mubr.f32.mxu0 %v10518_v0  ;;  %v3166_v53 = vand.u32 4294901760, %v3165_v50 }
  0xe4   : > { %1622 = vmatprep.subr.mxu0 %v10694_v36  ;;  %v3084_v36 = vsel %vm3083_vm5, %v3078_v33, %v3080_v30 }
  0xe5   : > { %v3089_v40 = vsel %vm303_vm3, %v3084_v36, 0 }
  0xe8   : > { %9919 = vmatmul.mubr.f32.vlgmr.msra.gmra.mrb[0].mxu1 %v10704_v39 }
  0xe9   : > { %9922 = vmatpush3.msra.mxu1 %v10711_v42  ;;  %9923 = vmatprep.mubr.msk.f32.mxu1 %vm10519_vm0, %v10518_v0  ;;  %v10852_v42 = vand.u32 4294901760, %v3093_v38 }
  0xea   : > { %1615 = vmatmul.mubr.f32.vlgmr.msra.gmra.mrb[0].mxu0 %v10704_v39  ;;  %9926 = vmatprep.subr.mxu1 %v10518_v0 }
  0xeb   : > { %1624 = vmatpush1.msra.mxu0 %v10715_v43  ;;  %1687 = vmatprep.mubr.f32.mxu0 %v10518_v0  ;;  %v10856_v43 = vand.u32 4294901760, %v3089_v40  ;;  %v3638_v46 = vsub.f32 %v3093_v38, %v10852_v42  ;;  %v10983_v38 = vand.u32 4294901760, %v4955_v34 }
  0xec   : > { %2162 = vmatprep.subr.mxu0 %v10763_v5 }
  0xed   : > { %v10869_v2 = vsub.f32 %v3089_v40, %v10856_v43  ;;  %v3639_v48 = vand.u32 4294901760, %v3638_v46 }
  0xef   : > { %v3181_v49 = vand.u32 4294901760, %v10869_v2  ;;  %v3640_v52 = vsub.f32 %v3638_v46, %v3639_v48 }
  0xf0   : > { %9924 = vmatmul.mubr.f32.vlgmr.msra.gmra.mrb[0].mxu1 %v10704_v39 }
  0xf1   : > { %9927 = vmatpush3.msra.mxu1 %v10779_v12  ;;  %9928 = vmatprep.mubr.msk.f32.mxu1 %vm10519_vm0, %v10518_v0  ;;  %v3182_v1 = vsub.f32 %v10869_v2, %v3181_v49  ;;  %v3641_v54 = vand.u32 4294901760, %v3640_v52 }
  0xf2   : > { %1689 = vmatmul.mubr.f32.vlgmr.msra.gmra.mrb[0].mxu0 %v10704_v39  ;;  %9931 = vmatprep.subr.mxu1 %v10518_v0  ;;  %v10847_v39 = vsub.f32 %v3091_v32, %v10836_v35 }
  0xf3   : > { %2164 = vmatpush1.msra.mxu0 %v10783_v13  ;;  %2227 = vmatprep.mubr.f32.mxu0 %v10518_v0  ;;  %v3183_v55 = vand.u32 4294901760, %v3182_v1 }
  0xf4   : > { %2244 = vmatprep.subr.mxu0 %v2243_v23  ;;  %v3175_v45 = vand.u32 4294901760, %v10847_v39 }
  0xf6   : > { %v3176_v47 = vsub.f32 %v10847_v39, %v3175_v45 }
  0xf8   : > { %9929 = vmatmul.mubr.f32.vlgmr.msra.gmra.mrb[0].mxu1 %v2232_v26  ;;  %v3177_v51 = vand.u32 4294901760, %v3176_v47 }
  0xf9   : > { %9932 = vmatpush3.msra.mxu1 %v2707_v27  ;;  %9933 = vmatprep.mubr.msk.f32.mxu1 %vm10519_vm0, %v10518_v0  ;;  %v4948_v27 = vpop.permute.xlu0 %4947 }
  0xfa   : > { %2233 = vmatmul.mubr.f32.vlgmr.msra.gmra.mrb[0].mxu0 %v2232_v26  ;;  %9936 = vmatprep.subr.mxu1 %v10518_v0  ;;  %v4950_v26 = vpop.permute.xlu1 %4949 }
  0xfb   : > { %2250 = vmatpush1.msra.mxu0 %v2249_v28  ;;  %2313 = vmatprep.mubr.f32.mxu0 %v10518_v0  ;;  %v4953_v28 = vsel %vm4951_vm7, %v4948_v27, %v4950_v26 }
  0xfc   : > { %2323 = vmatprep.subr.mxu0 %v10774_v10  ;;  %v10925_v10 = vand.u32 4294901760, %v4023_v6  ;;  %v4959_v29 = vsel %vm303_vm3, %v4953_v28, 0  ;;  %v280_v28 = vld [vmem:[%s11376_s6] sm:$0xff] }
  0xfd   : > { %v4946_v30 = vpop.permute.xlu0 %4945  ;;  %v10969_v32 = vand.u32 4294901760, %v4959_v29 }
  0xfe   : > { %v4952_v33 = vsel %vm4951_vm7, %v4946_v30, %v4948_v27  ;;  %v279_v30 = vld [vmem:[%s11375_s5] sm:$0xff] }
  0xff   : > { %v10980_v36 = vsub.f32 %v4959_v29, %v10969_v32  ;;  %v4957_v37 = vsel %vm303_vm3, %v4952_v33, 0  ;;  %v9741_v33 = vld [vmem:[%s11371_s1 + $0x1c] sm:$0xf] }
 0x100   : > { %9934 = vmatmul.mubr.f32.vlgmr.msra.gmra.mrb[0].mxu1 %v10777_v11  ;;  %v10987_v40 = vand.u32 4294901760, %v4957_v37 }
 0x101   : > { %9937 = vmatpush3.msra.mxu1 %v2704_v16  ;;  %9938 = vmatprep.mubr.msk.f32.mxu1 %vm10519_vm0, %v10518_v0 }
 0x102   : > { %2315 = vmatmul.mubr.f32.vlgmr.msra.gmra.mrb[0].mxu0 %v10777_v11  ;;  %9941 = vmatprep.subr.mxu1 %v10518_v0 }
 0x103   : > { %2326 = vmatpush1.msra.mxu0 %v10795_v17  ;;  %2389 = vmatprep.mubr.f32.mxu0 %v10518_v0 }
 0x104   : > { %2399 = vmatprep.subr.mxu0 %v10763_v5 }
 0x108   : > { %9939 = vmatmul.mubr.f32.vlgmr.msra.gmra.mrb[0].mxu1 %v2229_v14 }
 0x109   : > { %9942 = vmatpush3.msra.mxu1 %v10779_v12  ;;  %9943 = vmatprep.mubr.msk.f32.mxu1 %vm10519_vm0, %v10518_v0 }
 0x10a   : > { %2392 = vmatmul.mubr.f32.vlgmr.msra.gmra.mrb[0].mxu0 %v2229_v14  ;;  %9946 = vmatprep.subr.mxu1 %v10518_v0  ;;  %v4114_v14 = vsub.f32 %v4023_v6, %v10925_v10 }
 0x10b   : > { %2401 = vmatpush1.msra.mxu0 %v10783_v13  ;;  %2464 = vmatprep.mubr.f32.mxu0 %v10518_v0 }
 0x10c   : > { %2477 = vmatprep.subr.mxu0 %v2241_v15 }
 0x110   : > { %9944 = vmatmul.mubr.f32.vlgmr.msra.gmra.mrb[0].mxu1 %v2230_v18 }
 0x111   : > { %9947 = vmatpush3.msra.mxu1 %v2705_v20  ;;  %9948 = vmatprep.mubr.msk.f32.mxu1 %vm10519_vm0, %v10518_v0 }
 0x112   : > { %2468 = vmatmul.mubr.f32.vlgmr.msra.gmra.mrb[0].mxu0 %v2230_v18  ;;  %9951 = vmatprep.subr.mxu1 %v10518_v0  ;;  %v4115_v18 = vand.u32 4294901760, %v4114_v14 }
 0x113   : > { %2481 = vmatpush1.msra.mxu0 %v2247_v21  ;;  %2544 = vmatprep.mubr.f32.mxu0 %v10518_v0 }
 0x114   : > { %2553 = vmatprep.subr.mxu0 %v10763_v5  ;;  %v4027_v5 = vsel %vm303_vm3, %v4016_v56, 0  ;;  %v4116_v22 = vsub.f32 %v4114_v14, %v4115_v18 }
 0x115   : > { %v10923_v9 = vand.u32 4294901760, %v4027_v5 }
 0x116   : > { %v4117_v25 = vand.u32 4294901760, %v4116_v22 }
 0x118   : > { %9949 = vmatmul.mubr.f32.vlgmr.msra.gmra.mrb[0].mxu1 %v10777_v11 }
 0x119   : > { %9952 = vmatpush3.msra.mxu1 %v10779_v12  ;;  %9953 = vmatprep.mubr.msk.f32.mxu1 %vm10519_vm0, %v10518_v0  ;;  %v4109_v12 = vand.u32 4294901760, %v4108_v7 }
 0x11a   : > { %2546 = vmatmul.mubr.f32.vlgmr.msra.gmra.mrb[0].mxu0 %v10777_v11  ;;  %9956 = vmatprep.subr.mxu1 %v10518_v0 }
 0x11b   : > { %2555 = vmatpush1.msra.mxu0 %v10783_v13  ;;  %2618 = vmatprep.mubr.f32.mxu0 %v10518_v0  ;;  %v4572_v13 = vsub.f32 %v4027_v5, %v10923_v9  ;;  %v4110_v16 = vsub.f32 %v4108_v7, %v4109_v12  ;;  %v11048_v5 = vand.u32 4294901760, %v5889_v61 }
 0x11c   : > { %3096 = vmatprep.subr.mxu0 %v10836_v35 }
 0x11d   : > { %v4573_v17 = vand.u32 4294901760, %v4572_v13  ;;  %v4111_v20 = vand.u32 4294901760, %v4110_v16 }
 0x11f   : > { %v4574_v21 = vsub.f32 %v4572_v13, %v4573_v17 }
 0x120   : > { %9954 = vmatmul.mubr.f32.vlgmr.msra.gmra.mrb[0].mxu1 %v10777_v11 }
 0x121   : > { %9957 = vmatpush3.msra.mxu1 %v10852_v42  ;;  %9958 = vmatprep.mubr.msk.f32.mxu1 %vm10519_vm0, %v10518_v0  ;;  %v4575_v24 = vand.u32 4294901760, %v4574_v21 }
 0x122   : > { %2620 = vmatmul.mubr.f32.vlgmr.msra.gmra.mrb[0].mxu0 %v10777_v11  ;;  %9961 = vmatprep.subr.mxu1 %v10518_v0  ;;  %v4097_v11 = vsub.f32 %v4021_v4, %v10921_v8 }
 0x123   : > { %3098 = vmatpush1.msra.mxu0 %v10856_v43  ;;  %3161 = vmatprep.mubr.f32.mxu0 %v10518_v0 }
 0x124   : > { %3178 = vmatprep.subr.mxu0 %v3177_v51  ;;  %v4098_v15 = vand.u32 4294901760, %v4097_v11 }
 0x126   : > { %v4099_v19 = vsub.f32 %v4097_v11, %v4098_v15 }
 0x128   : > { %9959 = vmatmul.mubr.f32.vlgmr.msra.gmra.mrb[0].mxu1 %v3166_v53  ;;  %v4100_v23 = vand.u32 4294901760, %v4099_v19 }
 0x129   : > { %9962 = vmatpush3.msra.mxu1 %v3641_v54  ;;  %9963 = vmatprep.mubr.msk.f32.mxu1 %vm10519_vm0, %v10518_v0  ;;  %v5882_v54 = vpop.permute.xlu1 %5881 }
 0x12a   : > { %3167 = vmatmul.mubr.f32.vlgmr.msra.gmra.mrb[0].mxu0 %v3166_v53  ;;  %9966 = vmatprep.subr.mxu1 %v10518_v0  ;;  %v5884_v53 = vpop.permute.xlu0 %5883 }
 0x12b   : > { %3184 = vmatpush1.msra.mxu0 %v3183_v55  ;;  %3247 = vmatprep.mubr.f32.mxu0 %v10518_v0  ;;  %v5887_v55 = vsel %vm5885_vm8, %v5882_v54, %v5884_v53 }
 0x12c   : > { %3257 = vmatprep.subr.mxu0 %v10847_v39  ;;  %v5893_v56 = vsel %vm303_vm3, %v5887_v55, 0 }
 0x12d   : > { %v5880_v57 = vpop.permute.xlu1 %5879  ;;  %v11034_v59 = vand.u32 4294901760, %v5893_v56 }
 0x12e   : > { %v5886_v60 = vsel %vm5885_vm8, %v5880_v57, %v5882_v54  ;;  %v6816_v27 = vpop.permute.xlu0 %6815 }
 0x12f   : > { %v5891_v63 = vsel %vm303_vm3, %v5886_v60, 0  ;;  %v11046_v4 = vsub.f32 %v5893_v56, %v11034_v59  ;;  %v9742_v60 = vld [vmem:[%s11371_s1 + $0x20] sm:$0xf] }
 0x130   : > { %9964 = vmatmul.mubr.f32.vlgmr.msra.gmra.mrb[0].mxu1 %v10850_v41 }
 0x131   : > { %9967 = vmatpush3.msra.mxu1 %v3638_v46  ;;  %9968 = vmatprep.mubr.msk.f32.mxu1 %vm10519_vm0, %v10518_v0 }
 0x132   : > { %3249 = vmatmul.mubr.f32.vlgmr.msra.gmra.mrb[0].mxu0 %v10850_v41  ;;  %9971 = vmatprep.subr.mxu1 %v10518_v0 }
 0x133   : > { %3260 = vmatpush1.msra.mxu0 %v10869_v2  ;;  %3323 = vmatprep.mubr.f32.mxu0 %v10518_v0 }
 0x134   : > { %3333 = vmatprep.subr.mxu0 %v10836_v35 }
 0x138   : > { %9969 = vmatmul.mubr.f32.vlgmr.msra.gmra.mrb[0].mxu1 %v3163_v44 }
 0x139   : > { %9972 = vmatpush3.msra.mxu1 %v10852_v42  ;;  %9973 = vmatprep.mubr.msk.f32.mxu1 %vm10519_vm0, %v10518_v0 }
 0x13a   : > { %3326 = vmatmul.mubr.f32.vlgmr.msra.gmra.mrb[0].mxu0 %v3163_v44  ;;  %9976 = vmatprep.subr.mxu1 %v10518_v0  ;;  %v5048_v44 = vsub.f32 %v4957_v37, %v10987_v40 }
 0x13b   : > { %3335 = vmatpush1.msra.mxu0 %v10856_v43  ;;  %3398 = vmatprep.mubr.f32.mxu0 %v10518_v0 }
 0x13c   : > { %3411 = vmatprep.subr.mxu0 %v3175_v45 }
 0x140   : > { %9974 = vmatmul.mubr.f32.vlgmr.msra.gmra.mrb[0].mxu1 %v3164_v3 }
 0x141   : > { %9977 = vmatpush3.msra.mxu1 %v3639_v48  ;;  %9978 = vmatprep.mubr.msk.f32.mxu1 %vm10519_vm0, %v10518_v0 }
 0x142   : > { %3402 = vmatmul.mubr.f32.vlgmr.msra.gmra.mrb[0].mxu0 %v3164_v3  ;;  %9981 = vmatprep.subr.mxu1 %v10518_v0  ;;  %v5049_v3 = vand.u32 4294901760, %v5048_v44 }
 0x143   : > { %3415 = vmatpush1.msra.mxu0 %v3181_v49  ;;  %3478 = vmatprep.mubr.f32.mxu0 %v10518_v0 }
 0x144   : > { %3487 = vmatprep.subr.mxu0 %v10836_v35  ;;  %v4961_v35 = vsel %vm303_vm3, %v4950_v26, 0  ;;  %v5050_v50 = vsub.f32 %v5048_v44, %v5049_v3  ;;  %v6818_v26 = vpop.permute.xlu1 %6817 }
 0x145   : > { %v10985_v39 = vand.u32 4294901760, %v4961_v35  ;;  %v6821_v29 = vsel %vm6819_vm9, %v6816_v27, %v6818_v26  ;;  %v6829_v37 = vsel %vm303_vm3, %v6818_v26, 0 }
 0x146   : > { %v5051_v1 = vand.u32 4294901760, %v5050_v50  ;;  %v6827_v31 = vsel %vm303_vm3, %v6821_v29, 0 }
 0x148   : > { %9979 = vmatmul.mubr.f32.vlgmr.msra.gmra.mrb[0].mxu1 %v10850_v41  ;;  %v7750_v56 = vpop.permute.xlu1 %7749 }
 0x149   : > { %9982 = vmatpush3.msra.mxu1 %v10852_v42  ;;  %9983 = vmatprep.mubr.msk.f32.mxu1 %vm10519_vm0, %v10518_v0  ;;  %v5043_v42 = vand.u32 4294901760, %v10980_v36 }
 0x14a   : > { %3480 = vmatmul.mubr.f32.vlgmr.msra.gmra.mrb[0].mxu0 %v10850_v41  ;;  %9986 = vmatprep.subr.mxu1 %v10518_v0 }
 0x14b   : > { %3489 = vmatpush1.msra.mxu0 %v10856_v43  ;;  %3552 = vmatprep.mubr.f32.mxu0 %v10518_v0  ;;  %v5506_v43 = vsub.f32 %v4961_v35, %v10985_v39  ;;  %v5044_v46 = vsub.f32 %v10980_v36, %v5043_v42 }
 0x14c   : > { %4030 = vmatprep.subr.mxu0 %v10909_v62 }
 0x14d   : > { %v5507_v2 = vand.u32 4294901760, %v5506_v43  ;;  %v5045_v48 = vand.u32 4294901760, %v5044_v46 }
 0x14f   : > { %v5508_v49 = vsub.f32 %v5506_v43, %v5507_v2 }
 0x150   : > { %9984 = vmatmul.mubr.f32.vlgmr.msra.gmra.mrb[0].mxu1 %v10850_v41 }
 0x151   : > { %9987 = vmatpush3.msra.mxu1 %v10923_v9  ;;  %9988 = vmatprep.mubr.msk.f32.mxu1 %vm10519_vm0, %v10518_v0  ;;  %v5509_v52 = vand.u32 4294901760, %v5508_v49 }
 0x152   : > { %3554 = vmatmul.mubr.f32.vlgmr.msra.gmra.mrb[0].mxu0 %v10850_v41  ;;  %9991 = vmatprep.subr.mxu1 %v10518_v0  ;;  %v5031_v41 = vsub.f32 %v4955_v34, %v10983_v38  ;;  %v11131_v34 = vand.u32 4294901760, %v6827_v31 }
 0x153   : > { %4032 = vmatpush1.msra.mxu0 %v10925_v10  ;;  %4095 = vmatprep.mubr.f32.mxu0 %v10518_v0 }
 0x154   : > { %4112 = vmatprep.subr.mxu0 %v4111_v20  ;;  %v5032_v45 = vand.u32 4294901760, %v5031_v41 }
 0x156   : > { %v5033_v47 = vsub.f32 %v5031_v41, %v5032_v45 }
 0x158   : > { %9989 = vmatmul.mubr.f32.vlgmr.msra.gmra.mrb[0].mxu1 %v4100_v23  ;;  %v5034_v51 = vand.u32 4294901760, %v5033_v47 }
 0x159   : > { %9992 = vmatpush3.msra.mxu1 %v4575_v24  ;;  %9993 = vmatprep.mubr.msk.f32.mxu1 %vm10519_vm0, %v10518_v0  ;;  %v278_v24 = vld [vmem:[%s11374_s4] sm:$0xf] }
 0x15a   : > { %4101 = vmatmul.mubr.f32.vlgmr.msra.gmra.mrb[0].mxu0 %v4100_v23  ;;  %9996 = vmatprep.subr.mxu1 %v10518_v0  ;;  %v277_v23 = vld [vmem:[%s11373_s3] sm:$0xf] }
 0x15b   : > { %4118 = vmatpush1.msra.mxu0 %v4117_v25  ;;  %4181 = vmatprep.mubr.f32.mxu0 %v10518_v0  ;;  %v10528_v25 = vmov 0  }
 0x15c   : > { %4191 = vmatprep.subr.mxu0 %v4108_v7  ;;  %v11052_v7 = vand.u32 4294901760, %v5891_v63  ;;  %10451 = vset.pattern.permute.xlu0 %v10528_v25 }
 0x15d   : > { %8681 = vperm.xlu0 %10451, %v277_v23   ;;  %10452 = vset.pattern.permute.xlu1 %v10528_v25  ;;  %v281_v25 = vld [vmem:[%s11372_s2] sm:$0xff] }
 0x15e   : > { %8689 = vperm.xlu1 %10452, %v278_v24   ;;  %v8705_v26 = vsel %vm299_vm1, %v281_v25, 0 }
 0x160   : > { %9994 = vmatmul.mubr.f32.vlgmr.msra.gmra.mrb[0].mxu1 %v10921_v8 }
 0x161   : > { %9997 = vmatpush3.msra.mxu1 %v4572_v13  ;;  %9998 = vmatprep.mubr.msk.f32.mxu1 %vm10519_vm0, %v10518_v0 }
 0x162   : > { %4183 = vmatmul.mubr.f32.vlgmr.msra.gmra.mrb[0].mxu0 %v10921_v8  ;;  %10001 = vmatprep.subr.mxu1 %v10518_v0 }
 0x163   : > { %4194 = vmatpush1.msra.mxu0 %v4114_v14  ;;  %4257 = vmatprep.mubr.f32.mxu0 %v10518_v0 }
 0x164   : > { %4267 = vmatprep.subr.mxu0 %v10909_v62  ;;  %9637 = vperm.xlu0 %10451, %v280_v28  }
 0x165   : > { %9629 = vperm.xlu1 %10452, %v279_v30  }
 0x168   : > { %9999 = vmatmul.mubr.f32.vlgmr.msra.gmra.mrb[0].mxu1 %v4097_v11 }
 0x169   : > { %10002 = vmatpush3.msra.mxu1 %v10923_v9  ;;  %10003 = vmatprep.mubr.msk.f32.mxu1 %vm10519_vm0, %v10518_v0 }
 0x16a   : > { %4260 = vmatmul.mubr.f32.vlgmr.msra.gmra.mrb[0].mxu0 %v4097_v11  ;;  %10006 = vmatprep.subr.mxu1 %v10518_v0  ;;  %v11067_v11 = vsub.f32 %v5891_v63, %v11052_v7  ;;  %v7757_v63 = vsel %vm299_vm1, %v9742_v60, 0 }
 0x16b   : > { %4269 = vmatpush1.msra.mxu0 %v10925_v10  ;;  %4332 = vmatprep.mubr.f32.mxu0 %v10518_v0 }
 0x16c   : > { %4345 = vmatprep.subr.mxu0 %v4109_v12 }
 0x170   : > { %10004 = vmatmul.mubr.f32.vlgmr.msra.gmra.mrb[0].mxu1 %v4098_v15 }
 0x171   : > { %10007 = vmatpush3.msra.mxu1 %v4573_v17  ;;  %10008 = vmatprep.mubr.msk.f32.mxu1 %vm10519_vm0, %v10518_v0 }
 0x172   : > { %4336 = vmatmul.mubr.f32.vlgmr.msra.gmra.mrb[0].mxu0 %v4098_v15  ;;  %10011 = vmatprep.subr.mxu1 %v10518_v0  ;;  %v5983_v15 = vand.u32 4294901760, %v11067_v11 }
 0x173   : > { %4349 = vmatpush1.msra.mxu0 %v4115_v18  ;;  %4412 = vmatprep.mubr.f32.mxu0 %v10518_v0 }
 0x174   : > { %4421 = vmatprep.subr.mxu0 %v10909_v62  ;;  %v5895_v62 = vsel %vm303_vm3, %v5884_v53, 0  ;;  %v5984_v19 = vsub.f32 %v11067_v11, %v5983_v15 }
 0x175   : > { %v11050_v6 = vand.u32 4294901760, %v5895_v62 }
 0x176   : > { %v5985_v22 = vand.u32 4294901760, %v5984_v19 }
 0x178   : > { %10009 = vmatmul.mubr.f32.vlgmr.msra.gmra.mrb[0].mxu1 %v10921_v8 }
 0x179   : > { %10012 = vmatpush3.msra.mxu1 %v10923_v9  ;;  %10013 = vmatprep.mubr.msk.f32.mxu1 %vm10519_vm0, %v10518_v0  ;;  %v5977_v9 = vand.u32 4294901760, %v11046_v4 }
 0x17a   : > { %4414 = vmatmul.mubr.f32.vlgmr.msra.gmra.mrb[0].mxu0 %v10921_v8  ;;  %10016 = vmatprep.subr.mxu1 %v10518_v0 }
 0x17b   : > { %4423 = vmatpush1.msra.mxu0 %v10925_v10  ;;  %4486 = vmatprep.mubr.f32.mxu0 %v10518_v0  ;;  %v11059_v10 = vsub.f32 %v5895_v62, %v11050_v6  ;;  %v5978_v13 = vsub.f32 %v11046_v4, %v5977_v9 }
 0x17c   : > { %4964 = vmatprep.subr.mxu0 %v10969_v32 }
 0x17d   : > { %v6441_v14 = vand.u32 4294901760, %v11059_v10  ;;  %v5979_v17 = vand.u32 4294901760, %v5978_v13 }
 0x17f   : > { %v6442_v18 = vsub.f32 %v11059_v10, %v6441_v14 }
 0x180   : > { %10014 = vmatmul.mubr.f32.vlgmr.msra.gmra.mrb[0].mxu1 %v10921_v8 }
 0x181   : > { %10017 = vmatpush3.msra.mxu1 %v10985_v39  ;;  %10018 = vmatprep.mubr.msk.f32.mxu1 %vm10519_vm0, %v10518_v0  ;;  %v6443_v21 = vand.u32 4294901760, %v6442_v18 }
 0x182   : > { %4488 = vmatmul.mubr.f32.vlgmr.msra.gmra.mrb[0].mxu0 %v10921_v8  ;;  %10021 = vmatprep.subr.mxu1 %v10518_v0  ;;  %v5965_v8 = vsub.f32 %v5889_v61, %v11048_v5 }
 0x183   : > { %4966 = vmatpush1.msra.mxu0 %v10987_v40  ;;  %5029 = vmatprep.mubr.f32.mxu0 %v10518_v0 }
 0x184   : > { %5046 = vmatprep.subr.mxu0 %v5045_v48  ;;  %v11071_v12 = vand.u32 4294901760, %v5965_v8 }
 0x186   : > { %v5967_v16 = vsub.f32 %v5965_v8, %v11071_v12 }
 0x188   : > { %10019 = vmatmul.mubr.f32.vlgmr.msra.gmra.mrb[0].mxu1 %v5034_v51  ;;  %v5968_v20 = vand.u32 4294901760, %v5967_v16 }
 0x189   : > { %10022 = vmatpush3.msra.mxu1 %v5509_v52  ;;  %10023 = vmatprep.mubr.msk.f32.mxu1 %vm10519_vm0, %v10518_v0 }
 0x18a   : > { %5035 = vmatmul.mubr.f32.vlgmr.msra.gmra.mrb[0].mxu0 %v5034_v51  ;;  %10026 = vmatprep.subr.mxu1 %v10518_v0 }
 0x18b   : > { %5052 = vmatpush1.msra.mxu0 %v5051_v1  ;;  %5115 = vmatprep.mubr.f32.mxu0 %v10518_v0 }
 0x18c   : > { %5125 = vmatprep.subr.mxu0 %v10980_v36  ;;  %v6823_v36 = vsel %vm299_vm1, %v9741_v33, 0 }
 0x190   : > { %10024 = vmatmul.mubr.f32.vlgmr.msra.gmra.mrb[0].mxu1 %v10983_v38 }
 0x191   : > { %10027 = vmatpush3.msra.mxu1 %v5506_v43  ;;  %10028 = vmatprep.mubr.msk.f32.mxu1 %vm10519_vm0, %v10518_v0 }
 0x192   : > { %5117 = vmatmul.mubr.f32.vlgmr.msra.gmra.mrb[0].mxu0 %v10983_v38  ;;  %10031 = vmatprep.subr.mxu1 %v10518_v0 }
 0x193   : > { %5128 = vmatpush1.msra.mxu0 %v5048_v44  ;;  %5191 = vmatprep.mubr.f32.mxu0 %v10518_v0 }
 0x194   : > { %5201 = vmatprep.subr.mxu0 %v10969_v32 }
 0x198   : > { %10029 = vmatmul.mubr.f32.vlgmr.msra.gmra.mrb[0].mxu1 %v5031_v41 }
 0x199   : > { %10032 = vmatpush3.msra.mxu1 %v10985_v39  ;;  %10033 = vmatprep.mubr.msk.f32.mxu1 %vm10519_vm0, %v10518_v0 }
 0x19a   : > { %5194 = vmatmul.mubr.f32.vlgmr.msra.gmra.mrb[0].mxu0 %v5031_v41  ;;  %10036 = vmatprep.subr.mxu1 %v10518_v0  ;;  %v11150_v41 = vand.u32 4294901760, %v6829_v37 }
 0x19b   : > { %5203 = vmatpush1.msra.mxu0 %v10987_v40  ;;  %5266 = vmatprep.mubr.f32.mxu0 %v10518_v0 }
 0x19c   : > { %5279 = vmatprep.subr.mxu0 %v5043_v42 }
 0x1a0   : > { %10034 = vmatmul.mubr.f32.vlgmr.msra.gmra.mrb[0].mxu1 %v5032_v45 }
 0x1a1   : > { %10037 = vmatpush3.msra.mxu1 %v5507_v2  ;;  %10038 = vmatprep.mubr.msk.f32.mxu1 %vm10519_vm0, %v10518_v0 }
 0x1a2   : > { %5270 = vmatmul.mubr.f32.vlgmr.msra.gmra.mrb[0].mxu0 %v5032_v45  ;;  %10041 = vmatprep.subr.mxu1 %v10518_v0  ;;  %v7374_v45 = vsub.f32 %v6829_v37, %v11150_v41 }
 0x1a3   : > { %5283 = vmatpush1.msra.mxu0 %v5049_v3  ;;  %5346 = vmatprep.mubr.f32.mxu0 %v10518_v0 }
 0x1a4   : > { %5355 = vmatprep.subr.mxu0 %v10969_v32  ;;  %v6814_v32 = vpop.permute.xlu0 %6813  ;;  %v7375_v47 = vand.u32 4294901760, %v7374_v45 }
 0x1a5   : > { %v6820_v35 = vsel %vm6819_vm9, %v6814_v32, %v6816_v27  ;;  %v11276_v27 = vand.u32 4294901760, %v8705_v26 }
 0x1a6   : > { %v7376_v51 = vsub.f32 %v7374_v45, %v7375_v47 }
 0x1a7   : > { %v11279_v28 = vsub.f32 %v8705_v26, %v11276_v27 }
 0x1a8   : > { %10039 = vmatmul.mubr.f32.vlgmr.msra.gmra.mrb[0].mxu1 %v10983_v38  ;;  %v7377_v53 = vand.u32 4294901760, %v7376_v51  ;;  %v7752_v55 = vpop.permute.xlu0 %7751 }
 0x1a9   : > { %10042 = vmatpush3.msra.mxu1 %v10985_v39  ;;  %10043 = vmatprep.mubr.msk.f32.mxu1 %vm10519_vm0, %v10518_v0  ;;  %v6825_v39 = vsel %vm303_vm3, %v6820_v35, 0  ;;  %v7755_v57 = vsel %vm7753_vm10, %v7750_v56, %v7752_v55  ;;  %v11282_v32 = vand.u32 4294901760, %v11279_v28 }
 0x1aa   : > { %5348 = vmatmul.mubr.f32.vlgmr.msra.gmra.mrb[0].mxu0 %v10983_v38  ;;  %10046 = vmatprep.subr.mxu1 %v10518_v0  ;;  %v11152_v42 = vand.u32 4294901760, %v6825_v39  ;;  %v7761_v58 = vsel %vm303_vm3, %v7755_v57, 0 }
 0x1ab   : > { %5357 = vmatpush1.msra.mxu0 %v10987_v40  ;;  %5420 = vmatprep.mubr.f32.mxu0 %v10518_v0  ;;  %v11148_v40 = vand.u32 4294901760, %v6823_v36  ;;  %v11199_v61 = vand.u32 4294901760, %v7761_v58 }
 0x1ac   : > { %5898 = vmatprep.subr.mxu0 %v11034_v59  ;;  %v6916_v46 = vsub.f32 %v6825_v39, %v11152_v42 }
 0x1ad   : > { %v6899_v43 = vsub.f32 %v6823_v36, %v11148_v40 }
 0x1ae   : > { %v6917_v48 = vand.u32 4294901760, %v6916_v46 }
 0x1af   : > { %v6900_v2 = vand.u32 4294901760, %v6899_v43 }
 0x1b0   : > { %10044 = vmatmul.mubr.f32.vlgmr.msra.gmra.mrb[0].mxu1 %v10983_v38  ;;  %v6918_v52 = vsub.f32 %v6916_v46, %v6917_v48 }
 0x1b1   : > { %10047 = vmatpush3.msra.mxu1 %v11050_v6  ;;  %10048 = vmatprep.mubr.msk.f32.mxu1 %vm10519_vm0, %v10518_v0  ;;  %v6901_v49 = vsub.f32 %v6899_v43, %v6900_v2 }
 0x1b2   : > { %5422 = vmatmul.mubr.f32.vlgmr.msra.gmra.mrb[0].mxu0 %v10983_v38  ;;  %10051 = vmatprep.subr.mxu1 %v10518_v0  ;;  %v11145_v38 = vsub.f32 %v6827_v31, %v11131_v34  ;;  %v6919_v54 = vand.u32 4294901760, %v6918_v52 }
 0x1b3   : > { %5900 = vmatpush1.msra.mxu0 %v11052_v7  ;;  %5963 = vmatprep.mubr.f32.mxu0 %v10518_v0  ;;  %v6902_v1 = vand.u32 4294901760, %v6901_v49 }
 0x1b4   : > { %5980 = vmatprep.subr.mxu0 %v5979_v17  ;;  %v6911_v44 = vand.u32 4294901760, %v11145_v38 }
 0x1b6   : > { %v6912_v3 = vsub.f32 %v11145_v38, %v6911_v44 }
 0x1b8   : > { %10049 = vmatmul.mubr.f32.vlgmr.msra.gmra.mrb[0].mxu1 %v5968_v20  ;;  %v6913_v50 = vand.u32 4294901760, %v6912_v3 }
 0x1b9   : > { %10052 = vmatpush3.msra.mxu1 %v6443_v21  ;;  %10053 = vmatprep.mubr.msk.f32.mxu1 %vm10519_vm0, %v10518_v0 }
 0x1ba   : > { %5969 = vmatmul.mubr.f32.vlgmr.msra.gmra.mrb[0].mxu0 %v5968_v20  ;;  %10056 = vmatprep.subr.mxu1 %v10518_v0 }
 0x1bb   : > { %5986 = vmatpush1.msra.mxu0 %v5985_v22  ;;  %6049 = vmatprep.mubr.f32.mxu0 %v10518_v0 }
 0x1bc   : > { %6059 = vmatprep.subr.mxu0 %v11046_v4  ;;  %v7763_v4 = vsel %vm303_vm3, %v7752_v55, 0 }
 0x1c0   : > { %10054 = vmatmul.mubr.f32.vlgmr.msra.gmra.mrb[0].mxu1 %v11048_v5 }
 0x1c1   : > { %10057 = vmatpush3.msra.mxu1 %v11059_v10  ;;  %10058 = vmatprep.mubr.msk.f32.mxu1 %vm10519_vm0, %v10518_v0 }
 0x1c2   : > { %6051 = vmatmul.mubr.f32.vlgmr.msra.gmra.mrb[0].mxu0 %v11048_v5  ;;  %10061 = vmatprep.subr.mxu1 %v10518_v0 }
 0x1c3   : > { %6062 = vmatpush1.msra.mxu0 %v11067_v11  ;;  %6125 = vmatprep.mubr.f32.mxu0 %v10518_v0 }
 0x1c4   : > { %6135 = vmatprep.subr.mxu0 %v11034_v59 }
 0x1c8   : > { %10059 = vmatmul.mubr.f32.vlgmr.msra.gmra.mrb[0].mxu1 %v5965_v8 }
 0x1c9   : > { %10062 = vmatpush3.msra.mxu1 %v11050_v6  ;;  %10063 = vmatprep.mubr.msk.f32.mxu1 %vm10519_vm0, %v10518_v0 }
 0x1ca   : > { %6128 = vmatmul.mubr.f32.vlgmr.msra.gmra.mrb[0].mxu0 %v5965_v8  ;;  %10066 = vmatprep.subr.mxu1 %v10518_v0  ;;  %v11213_v8 = vand.u32 4294901760, %v7763_v4 }
 0x1cb   : > { %6137 = vmatpush1.msra.mxu0 %v11052_v7  ;;  %6200 = vmatprep.mubr.f32.mxu0 %v10518_v0 }
 0x1cc   : > { %6213 = vmatprep.subr.mxu0 %v5977_v9 }
 0x1d0   : > { %10064 = vmatmul.mubr.f32.vlgmr.msra.gmra.mrb[0].mxu1 %v11071_v12 }
 0x1d1   : > { %10067 = vmatpush3.msra.mxu1 %v6441_v14  ;;  %10068 = vmatprep.mubr.msk.f32.mxu1 %vm10519_vm0, %v10518_v0 }
 0x1d2   : > { %6204 = vmatmul.mubr.f32.vlgmr.msra.gmra.mrb[0].mxu0 %v11071_v12  ;;  %10071 = vmatprep.subr.mxu1 %v10518_v0  ;;  %v8308_v12 = vsub.f32 %v7763_v4, %v11213_v8 }
 0x1d3   : > { %6217 = vmatpush1.msra.mxu0 %v5983_v15  ;;  %6280 = vmatprep.mubr.f32.mxu0 %v10518_v0 }
 0x1d4   : > { %6289 = vmatprep.subr.mxu0 %v11034_v59  ;;  %v7748_v59 = vpop.permute.xlu1 %7747  ;;  %v8309_v16 = vand.u32 4294901760, %v8308_v12 }
 0x1d5   : > { %v7754_v62 = vsel %vm7753_vm10, %v7748_v59, %v7750_v56 }
 0x1d6   : > { %v8310_v20 = vsub.f32 %v8308_v12, %v8309_v16 }
 0x1d8   : > { %10069 = vmatmul.mubr.f32.vlgmr.msra.gmra.mrb[0].mxu1 %v11048_v5  ;;  %v8311_v23 = vand.u32 4294901760, %v8310_v20 }
 0x1d9   : > { %10072 = vmatpush3.msra.mxu1 %v11050_v6  ;;  %10073 = vmatprep.mubr.msk.f32.mxu1 %vm10519_vm0, %v10518_v0  ;;  %v7844_v6 = vsub.f32 %v7761_v58, %v11199_v61 }
 0x1da   : > { %6282 = vmatmul.mubr.f32.vlgmr.msra.gmra.mrb[0].mxu0 %v11048_v5  ;;  %10076 = vmatprep.subr.mxu1 %v10518_v0 }
 0x1db   : > { %6291 = vmatpush1.msra.mxu0 %v11052_v7  ;;  %6354 = vmatprep.mubr.f32.mxu0 %v10518_v0  ;;  %v11211_v7 = vand.u32 4294901760, %v7757_v63  ;;  %v7845_v11 = vand.u32 4294901760, %v7844_v6 }
 0x1dc   : > { %6832 = vmatprep.subr.mxu0 %v11131_v34  ;;  %v8682_v29 = vpop.permute.xlu0 %8681 }
 0x1dd   : > { %v7833_v10 = vsub.f32 %v7757_v63, %v11211_v7  ;;  %v7846_v15 = vsub.f32 %v7844_v6, %v7845_v11  ;;  %v8690_v31 = vpop.permute.xlu1 %8689 }
 0x1df   : > { %v7834_v14 = vand.u32 4294901760, %v7833_v10  ;;  %v7847_v19 = vand.u32 4294901760, %v7846_v15 }
 0x1e0   : > { %10074 = vmatmul.mubr.f32.vlgmr.msra.gmra.mrb[0].mxu1 %v11048_v5 }
 0x1e1   : > { %10077 = vmatpush3.msra.mxu1 %v11150_v41  ;;  %10078 = vmatprep.mubr.msk.f32.mxu1 %vm10519_vm0, %v10518_v0  ;;  %v7835_v18 = vsub.f32 %v7833_v10, %v7834_v14 }
 0x1e2   : > { %6356 = vmatmul.mubr.f32.vlgmr.msra.gmra.mrb[0].mxu0 %v11048_v5  ;;  %10081 = vmatprep.subr.mxu1 %v10518_v0  ;;  %v7759_v5 = vsel %vm303_vm3, %v7754_v62, 0 }
 0x1e3   : > { %6834 = vmatpush1.msra.mxu0 %v11152_v42  ;;  %6897 = vmatprep.mubr.f32.mxu0 %v10518_v0  ;;  %v11215_v9 = vand.u32 4294901760, %v7759_v5  ;;  %v7836_v22 = vand.u32 4294901760, %v7835_v18 }
 0x1e4   : > { %6914 = vmatprep.subr.mxu0 %v6913_v50 }
 0x1e5   : > { %v7850_v13 = vsub.f32 %v7759_v5, %v11215_v9  ;;  %v9630_v5 = vpop.permute.xlu1 %9629 }
 0x1e7   : > { %v7851_v17 = vand.u32 4294901760, %v7850_v13 }
 0x1e8   : > { %10079 = vmatmul.mubr.f32.vlgmr.msra.gmra.mrb[0].mxu1 %v6902_v1 }
 0x1e9   : > { %10082 = vmatpush3.msra.mxu1 %v7377_v53  ;;  %10083 = vmatprep.mubr.msk.f32.mxu1 %vm10519_vm0, %v10518_v0  ;;  %v7852_v21 = vsub.f32 %v7850_v13, %v7851_v17 }
 0x1ea   : > { %6903 = vmatmul.mubr.f32.vlgmr.msra.gmra.mrb[0].mxu0 %v6902_v1  ;;  %10086 = vmatprep.subr.mxu1 %v10518_v0 }
 0x1eb   : > { %6920 = vmatpush1.msra.mxu0 %v6919_v54  ;;  %6983 = vmatprep.mubr.f32.mxu0 %v10518_v0  ;;  %v7853_v24 = vand.u32 4294901760, %v7852_v21 }
 0x1ec   : > { %6993 = vmatprep.subr.mxu0 %v11145_v38 }
 0x1f0   : > { %10084 = vmatmul.mubr.f32.vlgmr.msra.gmra.mrb[0].mxu1 %v11148_v40 }
 0x1f1   : > { %10087 = vmatpush3.msra.mxu1 %v7374_v45  ;;  %10088 = vmatprep.mubr.msk.f32.mxu1 %vm10519_vm0, %v10518_v0 }
 0x1f2   : > { %6985 = vmatmul.mubr.f32.vlgmr.msra.gmra.mrb[0].mxu0 %v11148_v40  ;;  %10091 = vmatprep.subr.mxu1 %v10518_v0 }
 0x1f3   : > { %6996 = vmatpush1.msra.mxu0 %v6916_v46  ;;  %7059 = vmatprep.mubr.f32.mxu0 %v10518_v0 }
 0x1f4   : > { %7069 = vmatprep.subr.mxu0 %v11131_v34 }
 0x1f8   : > { %10089 = vmatmul.mubr.f32.vlgmr.msra.gmra.mrb[0].mxu1 %v6899_v43 }
 0x1f9   : > { %10092 = vmatpush3.msra.mxu1 %v11150_v41  ;;  %10093 = vmatprep.mubr.msk.f32.mxu1 %vm10519_vm0, %v10518_v0 }
 0x1fa   : > { %7062 = vmatmul.mubr.f32.vlgmr.msra.gmra.mrb[0].mxu0 %v6899_v43  ;;  %10096 = vmatprep.subr.mxu1 %v10518_v0 }
 0x1fb   : > { %7071 = vmatpush1.msra.mxu0 %v11152_v42  ;;  %7134 = vmatprep.mubr.f32.mxu0 %v10518_v0 }
 0x1fc   : > { %7147 = vmatprep.subr.mxu0 %v6911_v44 }
 0x200   : > { %10094 = vmatmul.mubr.f32.vlgmr.msra.gmra.mrb[0].mxu1 %v6900_v2 }
 0x201   : > { %10097 = vmatpush3.msra.mxu1 %v7375_v47  ;;  %10098 = vmatprep.mubr.msk.f32.mxu1 %vm10519_vm0, %v10518_v0 }
 0x202   : > { %7138 = vmatmul.mubr.f32.vlgmr.msra.gmra.mrb[0].mxu0 %v6900_v2  ;;  %10101 = vmatprep.subr.mxu1 %v10518_v0 }
 0x203   : > { %7151 = vmatpush1.msra.mxu0 %v6917_v48  ;;  %7214 = vmatprep.mubr.f32.mxu0 %v10518_v0 }
 0x204   : > { %7223 = vmatprep.subr.mxu0 %v11131_v34 }
 0x208   : > { %10099 = vmatmul.mubr.f32.vlgmr.msra.gmra.mrb[0].mxu1 %v11148_v40 }
 0x209   : > { %10102 = vmatpush3.msra.mxu1 %v11150_v41  ;;  %10103 = vmatprep.mubr.msk.f32.mxu1 %vm10519_vm0, %v10518_v0 }
 0x20a   : > { %7216 = vmatmul.mubr.f32.vlgmr.msra.gmra.mrb[0].mxu0 %v11148_v40  ;;  %10106 = vmatprep.subr.mxu1 %v10518_v0 }
 0x20b   : > { %7225 = vmatpush1.msra.mxu0 %v11152_v42  ;;  %7288 = vmatprep.mubr.f32.mxu0 %v10518_v0 }
 0x20c   : > { %7766 = vmatprep.subr.mxu0 %v11199_v61 }
 0x210   : > { %10104 = vmatmul.mubr.f32.vlgmr.msra.gmra.mrb[0].mxu1 %v11148_v40 }
 0x211   : > { %10107 = vmatpush3.msra.mxu1 %v11213_v8  ;;  %10108 = vmatprep.mubr.msk.f32.mxu1 %vm10519_vm0, %v10518_v0 }
 0x212   : > { %7290 = vmatmul.mubr.f32.vlgmr.msra.gmra.mrb[0].mxu0 %v11148_v40  ;;  %10111 = vmatprep.subr.mxu1 %v10518_v0  ;;  %v8786_v40 = vsub.f32 %v11279_v28, %v11282_v32 }
 0x213   : > { %7768 = vmatpush1.msra.mxu0 %v11215_v9  ;;  %7831 = vmatprep.mubr.f32.mxu0 %v10518_v0 }
 0x214   : > { %7848 = vmatprep.subr.mxu0 %v7847_v19  ;;  %v8787_v3 = vand.u32 4294901760, %v8786_v40 }
 0x218   : > { %10109 = vmatmul.mubr.f32.vlgmr.msra.gmra.mrb[0].mxu1 %v7836_v22 }
 0x219   : > { %10112 = vmatpush3.msra.mxu1 %v8311_v23  ;;  %10113 = vmatprep.mubr.msk.f32.mxu1 %vm10519_vm0, %v10518_v0 }
 0x21a   : > { %7837 = vmatmul.mubr.f32.vlgmr.msra.gmra.mrb[0].mxu0 %v7836_v22  ;;  %10116 = vmatprep.subr.mxu1 %v10518_v0 }
 0x21b   : > { %7854 = vmatpush1.msra.mxu0 %v7853_v24  ;;  %7917 = vmatprep.mubr.f32.mxu0 %v10518_v0 }
 0x21c   : > { %7927 = vmatprep.subr.mxu0 %v7844_v6 }
 0x220   : > { %10114 = vmatmul.mubr.f32.vlgmr.msra.gmra.mrb[0].mxu1 %v11211_v7 }
 0x221   : > { %10117 = vmatpush3.msra.mxu1 %v8308_v12  ;;  %10118 = vmatprep.mubr.msk.f32.mxu1 %vm10519_vm0, %v10518_v0 }
 0x222   : > { %7919 = vmatmul.mubr.f32.vlgmr.msra.gmra.mrb[0].mxu0 %v11211_v7  ;;  %10121 = vmatprep.subr.mxu1 %v10518_v0 }
 0x223   : > { %7930 = vmatpush1.msra.mxu0 %v7850_v13  ;;  %7993 = vmatprep.mubr.f32.mxu0 %v10518_v0 }
 0x224   : > { %8003 = vmatprep.subr.mxu0 %v11199_v61 }
 0x228   : > { %10119 = vmatmul.mubr.f32.vlgmr.msra.gmra.mrb[0].mxu1 %v7833_v10 }
 0x229   : > { %10122 = vmatpush3.msra.mxu1 %v11213_v8  ;;  %10123 = vmatprep.mubr.msk.f32.mxu1 %vm10519_vm0, %v10518_v0 }
 0x22a   : > { %7996 = vmatmul.mubr.f32.vlgmr.msra.gmra.mrb[0].mxu0 %v7833_v10  ;;  %10126 = vmatprep.subr.mxu1 %v10518_v0 }
 0x22b   : > { %8005 = vmatpush1.msra.mxu0 %v11215_v9  ;;  %8068 = vmatprep.mubr.f32.mxu0 %v10518_v0 }
 0x22c   : > { %8081 = vmatprep.subr.mxu0 %v7845_v11 }
 0x230   : > { %10124 = vmatmul.mubr.f32.vlgmr.msra.gmra.mrb[0].mxu1 %v7834_v14 }
 0x231   : > { %10127 = vmatpush3.msra.mxu1 %v8309_v16  ;;  %10128 = vmatprep.mubr.msk.f32.mxu1 %vm10519_vm0, %v10518_v0 }
 0x232   : > { %8072 = vmatmul.mubr.f32.vlgmr.msra.gmra.mrb[0].mxu0 %v7834_v14  ;;  %10131 = vmatprep.subr.mxu1 %v10518_v0 }
 0x233   : > { %8085 = vmatpush1.msra.mxu0 %v7851_v17  ;;  %8148 = vmatprep.mubr.f32.mxu0 %v10518_v0 }
 0x234   : > { %8157 = vmatprep.subr.mxu0 %v11199_v61 }
 0x238   : > { %10129 = vmatmul.mubr.f32.vlgmr.msra.gmra.mrb[0].mxu1 %v11211_v7 }
 0x239   : > { %10132 = vmatpush3.msra.mxu1 %v11213_v8  ;;  %10133 = vmatprep.mubr.msk.f32.mxu1 %vm10519_vm0, %v10518_v0 }
 0x23a   : > { %8150 = vmatmul.mubr.f32.vlgmr.msra.gmra.mrb[0].mxu0 %v11211_v7  ;;  %10136 = vmatprep.subr.mxu1 %v10518_v0 }
 0x23b   : > { %8159 = vmatpush1.msra.mxu0 %v11215_v9  ;;  %8222 = vmatprep.mubr.f32.mxu0 %v10518_v0  ;;  %v9638_v9 = vpop.permute.xlu0 %9637 }
 0x240   : > { %10134 = vmatmul.mubr.f32.vlgmr.msra.gmra.mrb[0].mxu1 %v11211_v7 }
 0x241   : > { %10138 = vmatprep.mubr.msk.f32.mxu1 %vm10519_vm0, %v10518_v0 }
 0x242   : > { %8224 = vmatmul.mubr.f32.vlgmr.msra.gmra.mrb[0].mxu0 %v11211_v7 }
 0x243   : > { %8782 = vmatprep.mubr.f32.mxu0 %v10518_v0 }
 0x313   : > { %v8672_v30 = vpop.f32.mrb[0].mxu1 }
 0x314   : > { %v8686_v33 = vmul.f32 %v8682_v29, %v8672_v30  ;;  %v10135_v34 = vpop.f32.mrb[1].mxu1 }
 0x315   : > { %v8225_v35 = vpop.f32.mrb[0].mxu0 }
 0x316   : > { %v8694_v36 = vadd.f32 %v8690_v31, %v8686_v33  ;;  %v8684_v37 = vmul.f32 %v8682_v29, %v8225_v35  ;;  %v8227_v38 = vpop.f32.mrb[1].mxu0 }
 0x317   : > { %v8685_v39 = vmul.f32 %v8682_v29, %v8227_v38 }
 0x318   : > { %vm8697_vm11 = vcmp.gt.f32.partialorder %v8694_v36, 0.0  ;;  %v8700_v41 = vmul.f32 0.2, %v8694_v36  ;;  %v8692_v42 = vadd.f32 %v8690_v31, %v8684_v37 }
 0x319   : > { %v8693_v43 = vadd.f32 %v8690_v31, %v8685_v39 }
 0x31a   : > { %v8703_v44 = vsel %vm8697_vm11, %v8694_v36, %v8700_v41  ;;  %vm8695_vm12 = vcmp.gt.f32.partialorder %v8692_v42, 0.0  ;;  %v8698_v45 = vmul.f32 0.2, %v8692_v42 }
 0x31b   : > { %vm8696_vm13 = vcmp.gt.f32.partialorder %v8693_v43, 0.0  ;;  %v8699_v46 = vmul.f32 0.2, %v8693_v43  ;;  %v8714_v2 = vsel %vm303_vm3, %v8703_v44, 0 }
 0x31c   : > { %v8701_v47 = vsel %vm8695_vm12, %v8692_v42, %v8698_v45  ;;  %v9182_v48 = vand.u32 4294901760, %v8714_v2 }
 0x31d   : > { %v8708_v49 = vsel %vm303_vm3, %v8701_v47, 0  ;;  %v8702_v50 = vsel %vm8696_vm13, %v8693_v43, %v8699_v46 }
 0x31e   : > { %v8711_v51 = vsel %vm303_vm3, %v8702_v50, 0  ;;  %10137 = vmatpush3.msra.mxu1 %v9182_v48  ;;  %v9259_v52 = vsub.f32 %v8714_v2, %v9182_v48  ;;  %v8718_v1 = vand.u32 4294901760, %v8708_v49 }
 0x31f   : > { %10139 = vmatmul.mubr.f32.vlgmr.msra.gmra.mrb[2].mxu1 %v8787_v3  ;;  %v8716_v53 = vand.u32 4294901760, %v8711_v51  ;;  %10141 = vmatprep.subr.mxu1 %v10518_v0 }
 0x320   : > { %v9260_v54 = vand.u32 4294901760, %v9259_v52  ;;  %10143 = vmatprep.mubr.msk.f32.mxu1 %vm10519_vm0, %v10518_v0  ;;  %v8801_v55 = vsub.f32 %v8708_v49, %v8718_v1 }
 0x321   : > { %8717 = vmatprep.subr.mxu0 %v8716_v53  ;;  %v8795_v56 = vsub.f32 %v8711_v51, %v8716_v53 }
 0x322   : > { %8719 = vmatpush1.msra.mxu0 %v8718_v1  ;;  %v9261_v57 = vsub.f32 %v9259_v52, %v9260_v54  ;;  %v8802_v58 = vand.u32 4294901760, %v8801_v55 }
 0x323   : > { %8788 = vmatmul.mubr.f32.vlgmr.msra.gmra.mrb[2].mxu0 %v8787_v3  ;;  %v8796_v59 = vand.u32 4294901760, %v8795_v56 }
 0x324   : > { %v9262_v60 = vand.u32 4294901760, %v9261_v57  ;;  %v8803_v61 = vsub.f32 %v8801_v55, %v8802_v58  ;;  %8868 = vmatprep.mubr.f32.mxu0 %v10518_v0 }
 0x325   : > { %v8797_v62 = vsub.f32 %v8795_v56, %v8796_v59 }
 0x326   : > { %10142 = vmatpush3.msra.mxu1 %v9262_v60  ;;  %v8804_v4 = vand.u32 4294901760, %v8803_v61 }
 0x327   : > { %10144 = vmatmul.mubr.f32.vlgmr.msra.gmra.mrb[2].mxu1 %v11276_v27  ;;  %10146 = vmatprep.subr.mxu1 %v10518_v0  ;;  %v8798_v63 = vand.u32 4294901760, %v8797_v62 }
 0x328   : > { %10147 = vmatpush3.msra.mxu1 %v9259_v52  ;;  %10148 = vmatprep.mubr.msk.f32.mxu1 %vm10519_vm0, %v10518_v0 }
 0x329   : > { %8799 = vmatprep.subr.mxu0 %v8798_v63  ;;  %10151 = vmatprep.subr.mxu1 %v10518_v0 }
 0x32a   : > { %8805 = vmatpush1.msra.mxu0 %v8804_v4 }
 0x32b   : > { %8870 = vmatmul.mubr.f32.vlgmr.msra.gmra.mrb[2].mxu0 %v11276_v27  ;;  %8878 = vmatprep.subr.mxu0 %v8795_v56 }
 0x32c   : > { %8881 = vmatpush1.msra.mxu0 %v8801_v55  ;;  %8944 = vmatprep.mubr.f32.mxu0 %v10518_v0 }
 0x32d   : > { %8954 = vmatprep.subr.mxu0 %v8716_v53 }
 0x32f   : > { %10149 = vmatmul.mubr.f32.vlgmr.msra.gmra.mrb[2].mxu1 %v11279_v28 }
 0x330   : > { %10152 = vmatpush3.msra.mxu1 %v9182_v48  ;;  %10153 = vmatprep.mubr.msk.f32.mxu1 %vm10519_vm0, %v10518_v0 }
 0x331   : > { %10156 = vmatprep.subr.mxu1 %v10518_v0 }
 0x333   : > { %8947 = vmatmul.mubr.f32.vlgmr.msra.gmra.mrb[2].mxu0 %v11279_v28 }
 0x334   : > { %8956 = vmatpush1.msra.mxu0 %v8718_v1  ;;  %9019 = vmatprep.mubr.f32.mxu0 %v10518_v0 }
 0x335   : > { %9032 = vmatprep.subr.mxu0 %v8796_v59 }
 0x337   : > { %10154 = vmatmul.mubr.f32.vlgmr.msra.gmra.mrb[2].mxu1 %v11282_v32 }
 0x338   : > { %10157 = vmatpush3.msra.mxu1 %v9260_v54  ;;  %10158 = vmatprep.mubr.msk.f32.mxu1 %vm10519_vm0, %v10518_v0 }
 0x339   : > { %10161 = vmatprep.subr.mxu1 %v10518_v0 }
 0x33b   : > { %9023 = vmatmul.mubr.f32.vlgmr.msra.gmra.mrb[2].mxu0 %v11282_v32 }
 0x33c   : > { %9036 = vmatpush1.msra.mxu0 %v8802_v58  ;;  %9099 = vmatprep.mubr.f32.mxu0 %v10518_v0 }
 0x33d   : > { %9108 = vmatprep.subr.mxu0 %v8716_v53 }
 0x33f   : > { %10159 = vmatmul.mubr.f32.vlgmr.msra.gmra.mrb[2].mxu1 %v11276_v27 }
 0x340   : > { %10162 = vmatpush3.msra.mxu1 %v9182_v48  ;;  %10163 = vmatprep.mubr.msk.f32.mxu1 %vm10519_vm0, %v10518_v0 }
 0x343   : > { %9101 = vmatmul.mubr.f32.vlgmr.msra.gmra.mrb[2].mxu0 %v11276_v27 }
 0x344   : > { %9110 = vmatpush1.msra.mxu0 %v8718_v1  ;;  %9173 = vmatprep.mubr.f32.mxu0 %v10518_v0 }
 0x347   : > { %10164 = vmatmul.mubr.f32.vlgmr.msra.gmra.mrb[2].mxu1 %v11276_v27 }
 0x34b   : > { %9175 = vmatmul.mubr.f32.vlgmr.msra.gmra.mrb[2].mxu0 %v11276_v27 }
 0x41a   : > { %v9623_v6 = vpop.f32.mrb[2].mxu1 }
 0x41b   : > { %v9634_v7 = vmul.f32 %v9630_v5, %v9623_v6  ;;  %v10165_v8 = vpop.f32.mrb[3].mxu1 }
 0x41d   : > { %v9642_v10 = vadd.f32 %v9638_v9, %v9634_v7 }
 0x41e   : > { %v9176_v11 = vpop.f32.mrb[2].mxu0 }
 0x41f   : > { %vm9645_vm14 = vcmp.gt.f32.partialorder %v9642_v10, 0.0  ;;  %v9648_v12 = vmul.f32 0.2, %v9642_v10  ;;  %v9632_v13 = vmul.f32 %v9630_v5, %v9176_v11  ;;  %v9178_v14 = vpop.f32.mrb[3].mxu0 }
 0x420   : > { %v9633_v0 = vmul.f32 %v9630_v5, %v9178_v14 }
 0x421   : > { %v9651_v15 = vsel %vm9645_vm14, %v9642_v10, %v9648_v12  ;;  %v9640_v16 = vadd.f32 %v9638_v9, %v9632_v13 }
 0x422   : > { %v9641_v17 = vadd.f32 %v9638_v9, %v9633_v0  ;;  %9655 = vst.msk [vmem:[%s271_s15 + $0x10] sm:$0xff] %vm9654_vm15, %v9651_v15 }
 0x423   : > { %vm9643_vm0 = vcmp.gt.f32.partialorder %v9640_v16, 0.0  ;;  %v9646_v18 = vmul.f32 0.2, %v9640_v16 }
 0x424   : > { %vm9644_vm1 = vcmp.gt.f32.partialorder %v9641_v17, 0.0  ;;  %v9647_v19 = vmul.f32 0.2, %v9641_v17 }
 0x425   : > { %v9649_v20 = vsel %vm9643_vm0, %v9640_v16, %v9646_v18 }
 0x426   : > { %9652 = vst [vmem:[%s271_s15] sm:$0xff] %v9649_v20  ;;  %v9650_v21 = vsel %vm9644_vm1, %v9641_v17, %v9647_v19 }
 0x427   : > { %9653 = vst [vmem:[%s271_s15 + $0x8] sm:$0xff] %v9650_v21 }
 0x428   : > { %10467 = shalt.err (!%p10464_p3)
}
 0x429   : > { %s10468_s29 = scalar_lea.hbm %s11326_s19, 384  ;;  %s10472_s13 = scalar_lea.hbm %s11377_s7, 768 }
 0x42a   : > { %p10469_p4 = scmp.ne.s32.totalorder %s11326_s19, %s10468_s29  ;;  %p10473_p9 = scmp.lt.u32.totalorder %s11326_s19, %s11377_s7 }
 0x42b   : > { %p10474_p10 = scmp.lt.u32.totalorder %s10472_s13, %s10468_s29  ;;  %p10476_p12 = scmp.lt.u32.totalorder %s10468_s29, %s11326_s19 }
 0x42c   : > { %p10470_p7 = pnand %p10469_p4, %p10608_p5 }
 0x42d   : > { %p10475_p11 = por %p10474_p10, %p10473_p9 }
 0x42e   : > { %p10471_p8 = pneg %p10470_p7 }
 0x42f   : > { %p10477_p13 = por %p10476_p12, %p10475_p11 }
 0x431   : > { %p10478_p0 = pnand %p10477_p13, %p10471_p8 }
 0x433   : > { %10481 = shalt.err (!%p10478_p0)
}
 0x434   : > { %10401 = dma.vmem_to_hbm [thread:$0]  (%p10608_p5), %s11328_s16, 384, %s11326_s19, %s9657_s28  }
 0x435 PF: > { %p10407_p1 = scmp.ge.s32.totalorder %s10516_s27, 2  ;;  %s9683_s17 = sand.u32 1, %s10504_s24  }
 0x436   : > { %s9684_s18 = scalar_lea.sflag [#allocation3], %s9683_s17 }
 0x437   : > { %p10404_p2 = pnand %p10407_p1, %p10612_p6 }
 0x439   : > { %10499 = dma.done.wait (!%p10404_p2), %s9684_s18, 384  }
 0x43a   : > { %10501 = vsyncadd (!%p10404_p2), %s9684_s18, 4294966912  ;;  %p17_p3 = scmp.ge.s32.totalorder %s10595_s30, 4   ;;  %s11380_s24 = smov %s10508_s25 }
 0x43b   : > { %s11381_s25 = smov %s10512_s26  ;;  %s11382_s26 = smov %s10606_s10 }
 0x43c   : > { %s11383_s27 = smov %s10595_s30  ;;  %19 = sbr.rel (!%p17_p3) target bundleno = 3 (0x3), region = 91 }
 0x443   :  { %9689 = vsyncpa [#allocation3], 1 }
 0x444   :  { %9691 = vsyncpa [#allocation3 + $0x1], 1 }

</bundles_post_ra>
